<compile_context>
chip_gen: v7x
topology: tpu7x:2x2x1
jax: 0.10.0
libtpu: 0.0.40
codegen_flags: <defaults>
</compile_context>

<pallas_src>
import functools

import jax
import jax.numpy as jnp
from jax.experimental import pallas as pl
from jax.experimental.pallas import tpu as pltpu

_VMEM_LIMIT_BYTES = 48 * 1024 * 1024    # <= ~48 MiB: safe on v7x (64 MiB physical VMEM)
_BLOCK_BUDGET_BYTES = 8 * 1024 * 1024   # per-block cap; in+out, double-buffered ~32 MiB


def _round_up(x, m):
    return (x + m - 1) // m * m


def _sublane(itemsize):
    return {4: 8, 2: 16, 1: 32}.get(itemsize, 8)


# ----------------------------- fast (lane-dense) path -----------------------------

def _shuffle_lane_dense_kernel(x_ref, o_ref, *, g, d):
    """x_ref/o_ref: (rt, g*d) lane-dense blocks; one batched (g,d)->(d,g) relayout."""
    rt = x_ref.shape[0]
    x = x_ref[...]                                    # unmasked full-lane loads
    y = jnp.swapaxes(x.reshape(rt, g, d), 1, 2)       # batched transpose on the XLU
    o_ref[...] = y.reshape(rt, g * d)                 # unmasked full-lane stores


def _choose_row_tile(rows, padded_row_bytes):
    """Largest row tile whose padded block fits the per-block VMEM budget.

    Returns (rt, padded_rows). rt is either == rows or a multiple of 8 (so the
    (8,128) BlockSpec rule holds); if no multiple-of-8 divisor of `rows` fits, we pad
    the row axis instead of degrading to tiny per-plane grid steps.
    """
    cap = max(1, _BLOCK_BUDGET_BYTES // max(padded_row_bytes, 1))
    if rows <= cap:
        return rows, rows                      # single (or few) big blocks
    best = 0
    for t in range(8, cap + 1, 8):             # multiples of 8 that divide rows
        if rows % t == 0:
            best = t
    if best:
        return best, rows
    rt = max(8, (cap // 8) * 8)
    return rt, pl.cdiv(rows, rt) * rt          # pad rows up to a multiple of rt


def _lane_dense_call(xr, g, d):
    rows, cols = xr.shape
    itemsize = jnp.dtype(xr.dtype).itemsize
    padded_row_bytes = _round_up(cols, 128) * itemsize
    rt, padded_rows = _choose_row_tile(rows, padded_row_bytes)
    if padded_rows != rows:
        xr = jnp.pad(xr, ((0, padded_rows - rows), (0, 0)))

    out = pl.pallas_call(
        functools.partial(_shuffle_lane_dense_kernel, g=g, d=d),
        out_shape=jax.ShapeDtypeStruct((padded_rows, cols), xr.dtype),
        grid_spec=pltpu.PrefetchScalarGridSpec(
            num_scalar_prefetch=0,
            grid=(padded_rows // rt,),
            in_specs=[pl.BlockSpec((rt, cols), lambda i: (i, 0))],
            out_specs=pl.BlockSpec((rt, cols), lambda i: (i, 0)),
        ),
        compiler_params=pltpu.CompilerParams(
            dimension_semantics=("parallel",),
            vmem_limit_bytes=_VMEM_LIMIT_BYTES,
        ),
    )(xr)
    return out[:rows] if padded_rows != rows else out


# ------------------------ verified fallback (per-row transpose) ------------------------

def _shuffle_rowwise_kernel(x_ref, o_ref):
    """x_ref: (rt, g, d); o_ref: (rt, d, g). Known-good (previously verified) path."""
    rt = x_ref.shape[0]

    def body(r, carry):
        o_ref[r] = x_ref[r].T
        return carry

    jax.lax.fori_loop(0, rt, body, 0, unroll=(True if rt <= 16 else 8))


def _rowwise_call(x3, g, d):
    rows = x3.shape[0]
    itemsize = jnp.dtype(x3.dtype).itemsize
    sub = _sublane(itemsize)
    # Padded VMEM bytes per row for the (rt,g,d) input + (rt,d,g) output blocks.
    per_row = (_round_up(g, sub) * _round_up(d, 128)
               + _round_up(d, sub) * _round_up(g, 128)) * itemsize
    cap = max(1, _BLOCK_BUDGET_BYTES // per_row)
    rt = 1
    for t in range(1, min(rows, cap) + 1):
        if rows % t == 0:
            rt = t

    return pl.pallas_call(
        _shuffle_rowwise_kernel,
        out_shape=jax.ShapeDtypeStruct((rows, d, g), x3.dtype),
        grid_spec=pltpu.PrefetchScalarGridSpec(
            num_scalar_prefetch=0,
            grid=(rows // rt,),
            in_specs=[pl.BlockSpec((rt, g, d), lambda i: (i, 0, 0))],
            out_specs=pl.BlockSpec((rt, d, g), lambda i: (i, 0, 0)),
        ),
        compiler_params=pltpu.CompilerParams(
            dimension_semantics=("parallel",),
            vmem_limit_bytes=_VMEM_LIMIT_BYTES,
        ),
    )(x3)


# ------------------------------------ wrapper ------------------------------------

_LANE_DENSE_UNSUPPORTED = set()


def channel_shuffle_forward(x):
    b, c, g, d = x.shape
    rows = b * c

    sig = (tuple(x.shape), jnp.dtype(x.dtype).name)
    if sig not in _LANE_DENSE_UNSUPPORTED:
        try:
            # (b,c,g,d) -> (rows, g*d) is a free row-major reinterpretation; the
            # (rows, g*d) output's bytes equal the shuffled (b,c,g,d) bytes, so the
            # final reshape is free too.
            out = _lane_dense_call(x.reshape(rows, g * d), g, d)
            return out.reshape(b, c, g, d)
        except Exception:
            # TODO(synk): drop this fallback once the batched reshape+swapaxes relayout
            # is confirmed to lower on all deployed Mosaic versions.
            _LANE_DENSE_UNSUPPORTED.add(sig)

    out3 = _rowwise_call(x.reshape(rows, g, d), g, d)   # (rows, d, g) == shuffled bytes
    return out3.reshape(b, c, g, d)


def channel_shuffle_reference(x):
    b, c, g, d = x.shape
    return jnp.swapaxes(x, -2, -1).reshape(b, c, g, d)


if __name__ == "__main__":
    key = jax.random.PRNGKey(0)

    # Small shape consistent with the module's forward signature x: (b, c, g, d).
    b, c, g, d = 2, 8, 4, 32            # rows = 16, g*d = 128 (lane-dense)
    x = jax.random.normal(key, (b, c, g, d), dtype=jnp.float32)

    out = jax.block_until_ready(channel_shuffle_forward(x))
    assert out.shape == (b, c, g, d)
    assert bool(jnp.array_equal(out, channel_shuffle_reference(x))), "f32 shuffle mismatch"

    # Pure data movement: bit-exact in bf16 as well (no wrapper casts, native dtype).
    xb = x.astype(jnp.bfloat16)
    outb = jax.block_until_ready(channel_shuffle_forward(xb))
    assert bool(jnp.array_equal(outb, channel_shuffle_reference(xb))), "bf16 shuffle mismatch"

    # Awkward shape: rows = 6 (not a multiple of 8), g*d = 96 (not a multiple of 128).
    x2 = jax.random.normal(jax.random.PRNGKey(1), (2, 3, 4, 24), dtype=jnp.float32)
    out2 = jax.block_until_ready(channel_shuffle_forward(x2))
    assert bool(jnp.array_equal(out2, channel_shuffle_reference(x2))), "odd-shape mismatch"

    print("KERNEL_OK")
</pallas_src>

<mosaic_0001>
module attributes {stable_mosaic.version = 11 : i64} {
  func.func @_shuffle_lane_dense_kernel(%arg0: i32, %arg1: memref<16x128xf32, #tpu.memory_space<vmem>>, %arg2: memref<16x128xf32, #tpu.memory_space<vmem>>) attributes {dimension_semantics = [#tpu.dimension_semantics<parallel>], iteration_bounds = array<i64: 1>, scalar_prefetch = 0 : i64, scratch_operands = 0 : i64, tpu.core_type = #tpu.core_type<tc>, window_params = [{transform_indices = @transform_0, window_bounds = array<i64: 16, 128>}, {transform_indices = @transform_1, window_bounds = array<i64: 16, 128>}]} {
    %c0 = arith.constant 0 : index
    %c0_0 = arith.constant 0 : index
    %0 = vector.load %arg1[%c0, %c0_0] : memref<16x128xf32, #tpu.memory_space<vmem>>, vector<16x128xf32>
    %1 = vector.shape_cast %0 : vector<16x128xf32> to vector<16x4x32xf32>
    %2 = tpu.transpose %1, [0, 2, 1] : vector<16x4x32xf32> -> vector<16x32x4xf32>
    %3 = vector.shape_cast %2 : vector<16x32x4xf32> to vector<16x128xf32>
    %c0_1 = arith.constant 0 : index
    %c0_2 = arith.constant 0 : index
    %4 = vector.load %arg2[%c0_1, %c0_2] : memref<16x128xf32, #tpu.memory_space<vmem>>, vector<16x128xf32>
    tpu.vector_store %arg2[%c0_1, %c0_2], %3 {strides = array<i32>} : memref<16x128xf32, #tpu.memory_space<vmem>>, vector<16x128xf32>,
    return
  }
  func.func @transform_0(%arg0: i32) -> (i32, i32) {
    %c0_i32 = arith.constant 0 : i32
    %c0_i32_0 = arith.constant 0 : i32
    return %arg0, %c0_i32 : i32, i32
  }
  func.func @transform_1(%arg0: i32) -> (i32, i32) {
    %c0_i32 = arith.constant 0 : i32
    %c0_i32_0 = arith.constant 0 : i32
    return %arg0, %c0_i32 : i32, i32
  }
}

module attributes {stable_mosaic.version = 11 : i64} {
  func.func @_shuffle_rowwise_kernel(%arg0: i32, %arg1: memref<16x4x32xf32, #tpu.memory_space<vmem>>, %arg2: memref<16x32x4xf32, #tpu.memory_space<vmem>>) attributes {dimension_semantics = [#tpu.dimension_semantics<parallel>], iteration_bounds = array<i64: 1>, scalar_prefetch = 0 : i64, scratch_operands = 0 : i64, tpu.core_type = #tpu.core_type<tc>, window_params = [{transform_indices = @transform_0, window_bounds = array<i64: 16, 4, 32>}, {transform_indices = @transform_1, window_bounds = array<i64: 16, 32, 4>}]} {
    %c0_i32 = arith.constant 0 : i32
    %0 = arith.index_cast %c0_i32 : i32 to index
    %c0 = arith.constant 0 : index
    %c0_0 = arith.constant 0 : index
    %1 = vector.load %arg1[%0, %c0, %c0_0] : memref<16x4x32xf32, #tpu.memory_space<vmem>>, vector<1x4x32xf32>
    %2 = vector.shape_cast %1 : vector<1x4x32xf32> to vector<4x32xf32>
    %3 = tpu.transpose %2, [1, 0] : vector<4x32xf32> -> vector<32x4xf32>
    %4 = arith.index_cast %c0_i32 : i32 to index
    %c0_1 = arith.constant 0 : index
    %c0_2 = arith.constant 0 : index
    %5 = vector.load %arg2[%4, %c0_1, %c0_2] : memref<16x32x4xf32, #tpu.memory_space<vmem>>, vector<1x32x4xf32>
    %6 = vector.shape_cast %5 : vector<1x32x4xf32> to vector<32x4xf32>
    %7 = vector.shape_cast %3 : vector<32x4xf32> to vector<1x32x4xf32>
    tpu.vector_store %arg2[%4, %c0_1, %c0_2], %7 {strides = array<i32>} : memref<16x32x4xf32, #tpu.memory_space<vmem>>, vector<1x32x4xf32>,
    %c1_i32 = arith.constant 1 : i32
    %8 = arith.index_cast %c1_i32 : i32 to index
    %c0_3 = arith.constant 0 : index
    %c0_4 = arith.constant 0 : index
    %9 = vector.load %arg1[%8, %c0_3, %c0_4] : memref<16x4x32xf32, #tpu.memory_space<vmem>>, vector<1x4x32xf32>
    %10 = vector.shape_cast %9 : vector<1x4x32xf32> to vector<4x32xf32>
    %11 = tpu.transpose %10, [1, 0] : vector<4x32xf32> -> vector<32x4xf32>
    %12 = arith.index_cast %c1_i32 : i32 to index
    %c0_5 = arith.constant 0 : index
    %c0_6 = arith.constant 0 : index
    %13 = vector.load %arg2[%12, %c0_5, %c0_6] : memref<16x32x4xf32, #tpu.memory_space<vmem>>, vector<1x32x4xf32>
    %14 = vector.shape_cast %13 : vector<1x32x4xf32> to vector<32x4xf32>
    %15 = vector.shape_cast %11 : vector<32x4xf32> to vector<1x32x4xf32>
    tpu.vector_store %arg2[%12, %c0_5, %c0_6], %15 {strides = array<i32>} : memref<16x32x4xf32, #tpu.memory_space<vmem>>, vector<1x32x4xf32>,
    %c2_i32 = arith.constant 2 : i32
    %16 = arith.index_cast %c2_i32 : i32 to index
    %c0_7 = arith.constant 0 : index
    %c0_8 = arith.constant 0 : index
    %17 = vector.load %arg1[%16, %c0_7, %c0_8] : memref<16x4x32xf32, #tpu.memory_space<vmem>>, vector<1x4x32xf32>
    %18 = vector.shape_cast %17 : vector<1x4x32xf32> to vector<4x32xf32>
    %19 = tpu.transpose %18, [1, 0] : vector<4x32xf32> -> vector<32x4xf32>
    %20 = arith.index_cast %c2_i32 : i32 to index
    %c0_9 = arith.constant 0 : index
    %c0_10 = arith.constant 0 : index
    %21 = vector.load %arg2[%20, %c0_9, %c0_10] : memref<16x32x4xf32, #tpu.memory_space<vmem>>, vector<1x32x4xf32>
    %22 = vector.shape_cast %21 : vector<1x32x4xf32> to vector<32x4xf32>
    %23 = vector.shape_cast %19 : vector<32x4xf32> to vector<1x32x4xf32>
    tpu.vector_store %arg2[%20, %c0_9, %c0_10], %23 {strides = array<i32>} : memref<16x32x4xf32, #tpu.memory_space<vmem>>, vector<1x32x4xf32>,
    %c3_i32 = arith.constant 3 : i32
    %24 = arith.index_cast %c3_i32 : i32 to index
    %c0_11 = arith.constant 0 : index
    %c0_12 = arith.constant 0 : index
    %25 = vector.load %arg1[%24, %c0_11, %c0_12] : memref<16x4x32xf32, #tpu.memory_space<vmem>>, vector<1x4x32xf32>
    %26 = vector.shape_cast %25 : vector<1x4x32xf32> to vector<4x32xf32>
    %27 = tpu.transpose %26, [1, 0] : vector<4x32xf32> -> vector<32x4xf32>
    %28 = arith.index_cast %c3_i32 : i32 to index
    %c0_13 = arith.constant 0 : index
    %c0_14 = arith.constant 0 : index
    %29 = vector.load %arg2[%28, %c0_13, %c0_14] : memref<16x32x4xf32, #tpu.memory_space<vmem>>, vector<1x32x4xf32>
    %30 = vector.shape_cast %29 : vector<1x32x4xf32> to vector<32x4xf32>
    %31 = vector.shape_cast %27 : vector<32x4xf32> to vector<1x32x4xf32>
    tpu.vector_store %arg2[%28, %c0_13, %c0_14], %31 {strides = array<i32>} : memref<16x32x4xf32, #tpu.memory_space<vmem>>, vector<1x32x4xf32>,
    %c4_i32 = arith.constant 4 : i32
    %32 = arith.index_cast %c4_i32 : i32 to index
    %c0_15 = arith.constant 0 : index
    %c0_16 = arith.constant 0 : index
    %33 = vector.load %arg1[%32, %c0_15, %c0_16] : memref<16x4x32xf32, #tpu.memory_space<vmem>>, vector<1x4x32xf32>
    %34 = vector.shape_cast %33 : vector<1x4x32xf32> to vector<4x32xf32>
    %35 = tpu.transpose %34, [1, 0] : vector<4x32xf32> -> vector<32x4xf32>
    %36 = arith.index_cast %c4_i32 : i32 to index
    %c0_17 = arith.constant 0 : index
    %c0_18 = arith.constant 0 : index
    %37 = vector.load %arg2[%36, %c0_17, %c0_18] : memref<16x32x4xf32, #tpu.memory_space<vmem>>, vector<1x32x4xf32>
    %38 = vector.shape_cast %37 : vector<1x32x4xf32> to vector<32x4xf32>
    %39 = vector.shape_cast %35 : vector<32x4xf32> to vector<1x32x4xf32>
    tpu.vector_store %arg2[%36, %c0_17, %c0_18], %39 {strides = array<i32>} : memref<16x32x4xf32, #tpu.memory_space<vmem>>, vector<1x32x4xf32>,
    %c5_i32 = arith.constant 5 : i32
    %40 = arith.index_cast %c5_i32 : i32 to index
    %c0_19 = arith.constant 0 : index
    %c0_20 = arith.constant 0 : index
    %41 = vector.load %arg1[%40, %c0_19, %c0_20] : memref<16x4x32xf32, #tpu.memory_space<vmem>>, vector<1x4x32xf32>
    %42 = vector.shape_cast %41 : vector<1x4x32xf32> to vector<4x32xf32>
    %43 = tpu.transpose %42, [1, 0] : vector<4x32xf32> -> vector<32x4xf32>
    %44 = arith.index_cast %c5_i32 : i32 to index
    %c0_21 = arith.constant 0 : index
    %c0_22 = arith.constant 0 : index
    %45 = vector.load %arg2[%44, %c0_21, %c0_22] : memref<16x32x4xf32, #tpu.memory_space<vmem>>, vector<1x32x4xf32>
    %46 = vector.shape_cast %45 : vector<1x32x4xf32> to vector<32x4xf32>
    %47 = vector.shape_cast %43 : vector<32x4xf32> to vector<1x32x4xf32>
    tpu.vector_store %arg2[%44, %c0_21, %c0_22], %47 {strides = array<i32>} : memref<16x32x4xf32, #tpu.memory_space<vmem>>, vector<1x32x4xf32>,
    %c6_i32 = arith.constant 6 : i32
    %48 = arith.index_cast %c6_i32 : i32 to index
    %c0_23 = arith.constant 0 : index
    %c0_24 = arith.constant 0 : index
    %49 = vector.load %arg1[%48, %c0_23, %c0_24] : memref<16x4x32xf32, #tpu.memory_space<vmem>>, vector<1x4x32xf32>
    %50 = vector.shape_cast %49 : vector<1x4x32xf32> to vector<4x32xf32>
    %51 = tpu.transpose %50, [1, 0] : vector<4x32xf32> -> vector<32x4xf32>
    %52 = arith.index_cast %c6_i32 : i32 to index
    %c0_25 = arith.constant 0 : index
    %c0_26 = arith.constant 0 : index
    %53 = vector.load %arg2[%52, %c0_25, %c0_26] : memref<16x32x4xf32, #tpu.memory_space<vmem>>, vector<1x32x4xf32>
    %54 = vector.shape_cast %53 : vector<1x32x4xf32> to vector<32x4xf32>
    %55 = vector.shape_cast %51 : vector<32x4xf32> to vector<1x32x4xf32>
    tpu.vector_store %arg2[%52, %c0_25, %c0_26], %55 {strides = array<i32>} : memref<16x32x4xf32, #tpu.memory_space<vmem>>, vector<1x32x4xf32>,
    %c7_i32 = arith.constant 7 : i32
    %56 = arith.index_cast %c7_i32 : i32 to index
    %c0_27 = arith.constant 0 : index
    %c0_28 = arith.constant 0 : index
    %57 = vector.load %arg1[%56, %c0_27, %c0_28] : memref<16x4x32xf32, #tpu.memory_space<vmem>>, vector<1x4x32xf32>
    %58 = vector.shape_cast %57 : vector<1x4x32xf32> to vector<4x32xf32>
    %59 = tpu.transpose %58, [1, 0] : vector<4x32xf32> -> vector<32x4xf32>
    %60 = arith.index_cast %c7_i32 : i32 to index
    %c0_29 = arith.constant 0 : index
    %c0_30 = arith.constant 0 : index
    %61 = vector.load %arg2[%60, %c0_29, %c0_30] : memref<16x32x4xf32, #tpu.memory_space<vmem>>, vector<1x32x4xf32>
    %62 = vector.shape_cast %61 : vector<1x32x4xf32> to vector<32x4xf32>
    %63 = vector.shape_cast %59 : vector<32x4xf32> to vector<1x32x4xf32>
    tpu.vector_store %arg2[%60, %c0_29, %c0_30], %63 {strides = array<i32>} : memref<16x32x4xf32, #tpu.memory_space<vmem>>, vector<1x32x4xf32>,
    %c8_i32 = arith.constant 8 : i32
    %64 = arith.index_cast %c8_i32 : i32 to index
    %c0_31 = arith.constant 0 : index
    %c0_32 = arith.constant 0 : index
    %65 = vector.load %arg1[%64, %c0_31, %c0_32] : memref<16x4x32xf32, #tpu.memory_space<vmem>>, vector<1x4x32xf32>
    %66 = vector.shape_cast %65 : vector<1x4x32xf32> to vector<4x32xf32>
    %67 = tpu.transpose %66, [1, 0] : vector<4x32xf32> -> vector<32x4xf32>
    %68 = arith.index_cast %c8_i32 : i32 to index
    %c0_33 = arith.constant 0 : index
    %c0_34 = arith.constant 0 : index
    %69 = vector.load %arg2[%68, %c0_33, %c0_34] : memref<16x32x4xf32, #tpu.memory_space<vmem>>, vector<1x32x4xf32>
    %70 = vector.shape_cast %69 : vector<1x32x4xf32> to vector<32x4xf32>
    %71 = vector.shape_cast %67 : vector<32x4xf32> to vector<1x32x4xf32>
    tpu.vector_store %arg2[%68, %c0_33, %c0_34], %71 {strides = array<i32>} : memref<16x32x4xf32, #tpu.memory_space<vmem>>, vector<1x32x4xf32>,
    %c9_i32 = arith.constant 9 : i32
    %72 = arith.index_cast %c9_i32 : i32 to index
    %c0_35 = arith.constant 0 : index
    %c0_36 = arith.constant 0 : index
    %73 = vector.load %arg1[%72, %c0_35, %c0_36] : memref<16x4x32xf32, #tpu.memory_space<vmem>>, vector<1x4x32xf32>
    %74 = vector.shape_cast %73 : vector<1x4x32xf32> to vector<4x32xf32>
    %75 = tpu.transpose %74, [1, 0] : vector<4x32xf32> -> vector<32x4xf32>
    %76 = arith.index_cast %c9_i32 : i32 to index
    %c0_37 = arith.constant 0 : index
    %c0_38 = arith.constant 0 : index
    %77 = vector.load %arg2[%76, %c0_37, %c0_38] : memref<16x32x4xf32, #tpu.memory_space<vmem>>, vector<1x32x4xf32>
    %78 = vector.shape_cast %77 : vector<1x32x4xf32> to vector<32x4xf32>
    %79 = vector.shape_cast %75 : vector<32x4xf32> to vector<1x32x4xf32>
    tpu.vector_store %arg2[%76, %c0_37, %c0_38], %79 {strides = array<i32>} : memref<16x32x4xf32, #tpu.memory_space<vmem>>, vector<1x32x4xf32>,
    %c10_i32 = arith.constant 10 : i32
    %80 = arith.index_cast %c10_i32 : i32 to index
    %c0_39 = arith.constant 0 : index
    %c0_40 = arith.constant 0 : index
    %81 = vector.load %arg1[%80, %c0_39, %c0_40] : memref<16x4x32xf32, #tpu.memory_space<vmem>>, vector<1x4x32xf32>
    %82 = vector.shape_cast %81 : vector<1x4x32xf32> to vector<4x32xf32>
    %83 = tpu.transpose %82, [1, 0] : vector<4x32xf32> -> vector<32x4xf32>
    %84 = arith.index_cast %c10_i32 : i32 to index
    %c0_41 = arith.constant 0 : index
    %c0_42 = arith.constant 0 : index
    %85 = vector.load %arg2[%84, %c0_41, %c0_42] : memref<16x32x4xf32, #tpu.memory_space<vmem>>, vector<1x32x4xf32>
    %86 = vector.shape_cast %85 : vector<1x32x4xf32> to vector<32x4xf32>
    %87 = vector.shape_cast %83 : vector<32x4xf32> to vector<1x32x4xf32>
    tpu.vector_store %arg2[%84, %c0_41, %c0_42], %87 {strides = array<i32>} : memref<16x32x4xf32, #tpu.memory_space<vmem>>, vector<1x32x4xf32>,
    %c11_i32 = arith.constant 11 : i32
    %88 = arith.index_cast %c11_i32 : i32 to index
    %c0_43 = arith.constant 0 : index
    %c0_44 = arith.constant 0 : index
    %89 = vector.load %arg1[%88, %c0_43, %c0_44] : memref<16x4x32xf32, #tpu.memory_space<vmem>>, vector<1x4x32xf32>
    %90 = vector.shape_cast %89 : vector<1x4x32xf32> to vector<4x32xf32>
    %91 = tpu.transpose %90, [1, 0] : vector<4x32xf32> -> vector<32x4xf32>
    %92 = arith.index_cast %c11_i32 : i32 to index
    %c0_45 = arith.constant 0 : index
    %c0_46 = arith.constant 0 : index
    %93 = vector.load %arg2[%92, %c0_45, %c0_46] : memref<16x32x4xf32, #tpu.memory_space<vmem>>, vector<1x32x4xf32>
    %94 = vector.shape_cast %93 : vector<1x32x4xf32> to vector<32x4xf32>
    %95 = vector.shape_cast %91 : vector<32x4xf32> to vector<1x32x4xf32>
    tpu.vector_store %arg2[%92, %c0_45, %c0_46], %95 {strides = array<i32>} : memref<16x32x4xf32, #tpu.memory_space<vmem>>, vector<1x32x4xf32>,
    %c12_i32 = arith.constant 12 : i32
    %96 = arith.index_cast %c12_i32 : i32 to index
    %c0_47 = arith.constant 0 : index
    %c0_48 = arith.constant 0 : index
    %97 = vector.load %arg1[%96, %c0_47, %c0_48] : memref<16x4x32xf32, #tpu.memory_space<vmem>>, vector<1x4x32xf32>
    %98 = vector.shape_cast %97 : vector<1x4x32xf32> to vector<4x32xf32>
    %99 = tpu.transpose %98, [1, 0] : vector<4x32xf32> -> vector<32x4xf32>
    %100 = arith.index_cast %c12_i32 : i32 to index
    %c0_49 = arith.constant 0 : index
    %c0_50 = arith.constant 0 : index
    %101 = vector.load %arg2[%100, %c0_49, %c0_50] : memref<16x32x4xf32, #tpu.memory_space<vmem>>, vector<1x32x4xf32>
    %102 = vector.shape_cast %101 : vector<1x32x4xf32> to vector<32x4xf32>
    %103 = vector.shape_cast %99 : vector<32x4xf32> to vector<1x32x4xf32>
    tpu.vector_store %arg2[%100, %c0_49, %c0_50], %103 {strides = array<i32>} : memref<16x32x4xf32, #tpu.memory_space<vmem>>, vector<1x32x4xf32>,
    %c13_i32 = arith.constant 13 : i32
    %104 = arith.index_cast %c13_i32 : i32 to index
    %c0_51 = arith.constant 0 : index
    %c0_52 = arith.constant 0 : index
    %105 = vector.load %arg1[%104, %c0_51, %c0_52] : memref<16x4x32xf32, #tpu.memory_space<vmem>>, vector<1x4x32xf32>
    %106 = vector.shape_cast %105 : vector<1x4x32xf32> to vector<4x32xf32>
    %107 = tpu.transpose %106, [1, 0] : vector<4x32xf32> -> vector<32x4xf32>
    %108 = arith.index_cast %c13_i32 : i32 to index
    %c0_53 = arith.constant 0 : index
    %c0_54 = arith.constant 0 : index
    %109 = vector.load %arg2[%108, %c0_53, %c0_54] : memref<16x32x4xf32, #tpu.memory_space<vmem>>, vector<1x32x4xf32>
    %110 = vector.shape_cast %109 : vector<1x32x4xf32> to vector<32x4xf32>
    %111 = vector.shape_cast %107 : vector<32x4xf32> to vector<1x32x4xf32>
    tpu.vector_store %arg2[%108, %c0_53, %c0_54], %111 {strides = array<i32>} : memref<16x32x4xf32, #tpu.memory_space<vmem>>, vector<1x32x4xf32>,
    %c14_i32 = arith.constant 14 : i32
    %112 = arith.index_cast %c14_i32 : i32 to index
    %c0_55 = arith.constant 0 : index
    %c0_56 = arith.constant 0 : index
    %113 = vector.load %arg1[%112, %c0_55, %c0_56] : memref<16x4x32xf32, #tpu.memory_space<vmem>>, vector<1x4x32xf32>
    %114 = vector.shape_cast %113 : vector<1x4x32xf32> to vector<4x32xf32>
    %115 = tpu.transpose %114, [1, 0] : vector<4x32xf32> -> vector<32x4xf32>
    %116 = arith.index_cast %c14_i32 : i32 to index
    %c0_57 = arith.constant 0 : index
    %c0_58 = arith.constant 0 : index
    %117 = vector.load %arg2[%116, %c0_57, %c0_58] : memref<16x32x4xf32, #tpu.memory_space<vmem>>, vector<1x32x4xf32>
    %118 = vector.shape_cast %117 : vector<1x32x4xf32> to vector<32x4xf32>
    %119 = vector.shape_cast %115 : vector<32x4xf32> to vector<1x32x4xf32>
    tpu.vector_store %arg2[%116, %c0_57, %c0_58], %119 {strides = array<i32>} : memref<16x32x4xf32, #tpu.memory_space<vmem>>, vector<1x32x4xf32>,
    %c15_i32 = arith.constant 15 : i32
    %120 = arith.index_cast %c15_i32 : i32 to index
    %c0_59 = arith.constant 0 : index
    %c0_60 = arith.constant 0 : index
    %121 = vector.load %arg1[%120, %c0_59, %c0_60] : memref<16x4x32xf32, #tpu.memory_space<vmem>>, vector<1x4x32xf32>
    %122 = vector.shape_cast %121 : vector<1x4x32xf32> to vector<4x32xf32>
    %123 = tpu.transpose %122, [1, 0] : vector<4x32xf32> -> vector<32x4xf32>
    %124 = arith.index_cast %c15_i32 : i32 to index
    %c0_61 = arith.constant 0 : index
    %c0_62 = arith.constant 0 : index
    %125 = vector.load %arg2[%124, %c0_61, %c0_62] : memref<16x32x4xf32, #tpu.memory_space<vmem>>, vector<1x32x4xf32>
    %126 = vector.shape_cast %125 : vector<1x32x4xf32> to vector<32x4xf32>
    %127 = vector.shape_cast %123 : vector<32x4xf32> to vector<1x32x4xf32>
    tpu.vector_store %arg2[%124, %c0_61, %c0_62], %127 {strides = array<i32>} : memref<16x32x4xf32, #tpu.memory_space<vmem>>, vector<1x32x4xf32>,
    %c16_i32 = arith.constant 16 : i32
    return
  }
  func.func @transform_0(%arg0: i32) -> (i32, i32, i32) {
    %c0_i32 = arith.constant 0 : i32
    %c0_i32_0 = arith.constant 0 : i32
    %c0_i32_1 = arith.constant 0 : i32
    return %arg0, %c0_i32, %c0_i32_0 : i32, i32, i32
  }
  func.func @transform_1(%arg0: i32) -> (i32, i32, i32) {
    %c0_i32 = arith.constant 0 : i32
    %c0_i32_0 = arith.constant 0 : i32
    %c0_i32_1 = arith.constant 0 : i32
    return %arg0, %c0_i32, %c0_i32_0 : i32, i32, i32
  }
}

</mosaic_0001>

<bundles_post_ra>
// kernel: tpu_custom_call.1
= control target key start
LH: loop header
LB: loop body
LE: loop exit
PB: predicated region body
PF: predicated region fallthrough
CT: control target
= control target key end

     0   :  { %6 = vsyncpa [#allocation3], 0  ;;  %s3061_s0 = inlined_call_operand.hbm [shape: f32[16,128], index: 0, kind: input, shape index: {}]   ;;  %s3062_s1 = inlined_call_operand.hbm [shape: f32[16,128], index: 1, kind: output, shape index: {}]  }
   0x1   :  { %7 = vsyncpa [#allocation4], 0  ;;  %s2226_s6 = smov [#allocation2]   ;;  %s2178_s10 = scalar_lea.hbm %s3061_s0, 256 }
   0x2   :  { %s13_s7 = sshll.u32 %s2226_s6, 4  ;;  %p2179_p0 = scmp.ne.s32.totalorder %s3061_s0, %s2178_s10  ;;  %s14_s7 = int_to_ptr.vmem [resolvable:$true] %s13_s7 }
   0x3   :  { %p2182_p1 = scmp.lt.u32.totalorder %s2178_s10, %s3061_s0 }
   0x5   :  { %p2184_p2 = pnand %p2182_p1, %p2179_p0 }
   0x7   :  { %2187 = shalt.err (!%p2184_p2)
}
   0x8   :  { %s2188_s15 = scalar_lea.vmem %s14_s7, 256  ;;  %p2193_p4 = scmp.lt.s32.totalorder %s14_s7, %s14_s7 }
   0x9   :  { %p2189_p3 = scmp.ne.s32.totalorder %s14_s7, %s2188_s15  ;;  %p2194_p5 = scmp.lt.s32.totalorder %s2188_s15, %s2188_s15 }
   0xb   :  { %p2195_p6 = por %p2194_p5, %p2193_p4 }
   0xd   :  { %p2196_p7 = pnand %p2195_p6, %p2189_p3 }
   0xf   :  { %2199 = shalt.err (!%p2196_p7)
}
  0x10   :  { %s2227_s16 = smov 128   ;;  %s2228_s17 = smov 8  }
  0x11   :  { %19 = dma.hbm_to_vmem [thread:$0]  %s3061_s0, 256, %s14_s7, [#allocation3], %s2227_s16, %s2227_s16, %s2228_s17  }
  0x12   :  { %2222 = dma.done.wait [#allocation3], 256  }
  0x13   :  { %2223 = vsyncadd [#allocation3], 4294967040  ;;  %v23_v0 = vld [vmem:[#allocation2] sm:$0xff]  ;;  %s2229_s20 = smov 64   ;;  %s2230_s21 = smov 96   ;;  %v2290_v1 = vld [vmem:[#allocation2 + $0x8] sm:$0xff]  ;;  %v50_v4 = vlaneseq }
  0x14   :  { %33 = vrot.lane.b32.xlu1 %v23_v0, %s2229_s20  ;;  %27 = vrot.lane.b32.xlu0 %v23_v0, %s2230_s21  ;;  %s2231_s22 = smov 32   ;;  %v2232_v2 = vmov 1983009808   ;;  %v2233_v8 = vmov 1934713408   ;;  %v2234_v22 = vmov 0.0  }
  0x15   :  { %v48_v3 = vunpack.c.l.s4 %v2232_v2  ;;  %v51_v7 = vshrl.u32 %v50_v4, 7  ;;  %v80_v9 = vunpack.c.l.s4 %v2233_v8  ;;  %s2235_s0 = smov 4   ;;  %s2236_s23 = smov 12   ;;  %vm2029_vm0 = vcmask 31744  }
  0x16   :  { %s2237_s24 = smov 16   ;;  %s2238_s25 = smov 20   ;;  %vm2032_vm1 = vcmask 64512   ;;  %vm2035_vm2 = vcmask 97280   ;;  %vm2038_vm3 = vcmask 130048   ;;  %vm2041_vm4 = vcmask 162816  }
  0x17   :  { %v49_v6 = vunpack.c.0.s8 %v48_v3  ;;  %v81_v14 = vunpack.c.0.s8 %v80_v9  ;;  %s2239_s26 = smov 24   ;;  %s2240_s27 = smov 28   ;;  %vm2044_vm5 = vcmask 195584   ;;  %vm2047_vm6 = vcmask 228352  }
  0x18   :  { %35 = vrot.lane.b32.xlu1 %v2290_v1, %s2229_s20  ;;  %29 = vrot.lane.b32.xlu0 %v2290_v1, %s2230_s21  ;;  %s2241_s28 = smov 36   ;;  %s2242_s29 = smov 40   ;;  %vm2050_vm7 = vcmask 261120   ;;  %vm2053_vm8 = vcmask 293888   ;;  %vm2056_vm9 = vcmask 326656   ;;  %vm2059_vm10 = vcmask 359424  }
  0x19   :  { %v2299_v13 = vsub.s32 %v49_v6, %v51_v7  ;;  %v2303_v19 = vsub.s32 %v81_v14, %v51_v7  ;;  %s2243_s30 = smov 44   ;;  %s2244_s2 = smov 48   ;;  %vm2062_vm11 = vcmask 392192   ;;  %vm2065_vm12 = vcmask 424960  }
  0x1a   :  { %s2245_s3 = smov 52   ;;  %s2246_s4 = smov 56   ;;  %vm2068_vm13 = vcmask 457728   ;;  %vm2071_vm14 = vcmask 490496   ;;  %vm2074_vm15 = vcmask 523264  }
  0x1b   :  { %s2247_s5 = smov 60   ;;  %s2248_s6 = smov 68  }
  0x1c   :  { %41 = vrot.lane.b32.xlu1 %v2290_v1, %s2231_s22  ;;  %39 = vrot.lane.b32.xlu0 %v23_v0, %s2231_s22  ;;  %s2249_s7 = smov 72   ;;  %s2250_s8 = smov 76  }
  0x1d   :  { %s2251_s9 = smov 80   ;;  %s2252_s10 = smov 84  }
  0x1e   :  { %s2253_s11 = smov 88   ;;  %s2254_s12 = smov 92  }
  0x1f   :  { %s2255_s13 = smov 100   ;;  %s2256_s14 = smov 104  }
  0x20   :  { %s2257_s15 = smov 108   ;;  %s2258_s18 = smov 112  }
  0x21   :  { %s2259_s19 = smov 116  }
  0x86   :  { %v28_v5 = vpop.permute.xlu0 %27  ;;  %v34_v10 = vpop.permute.xlu1 %33 }
  0x87   :  { %v45_v12 = vcombine.low %v23_v0, %v34_v10  ;;  %v46_v26 = vcombine.high %v23_v0, %v34_v10 }
  0x89   :  { %v53_v17 = vrot.slane %v45_v12, %v2299_v13  ;;  %v60_v29 = vrot.slane %v46_v26, %v2299_v13 }
  0x8a   :  { %v30_v11 = vpop.permute.xlu0 %29  ;;  %v36_v34 = vpop.permute.xlu1 %35 }
  0x8b   :  { %v113_v38 = vcombine.low %v2290_v1, %v36_v34  ;;  %v114_v48 = vcombine.high %v2290_v1, %v36_v34 }
  0x8d   :  { %v121_v41 = vrot.slane %v113_v38, %v2299_v13  ;;  %v128_v51 = vrot.slane %v114_v48, %v2299_v13 }
  0x8e   :  { %v40_v15 = vpop.permute.xlu0 %39  ;;  %v42_v36 = vpop.permute.xlu1 %41 }
  0x8f   :  { %v61_v16 = vcombine.low %v28_v5, %v40_v15  ;;  %v62_v27 = vcombine.high %v28_v5, %v40_v15  ;;  %v129_v39 = vcombine.low %v30_v11, %v42_v36  ;;  %v130_v49 = vcombine.high %v30_v11, %v42_v36 }
  0x91   :  { %v69_v18 = vrot.slane %v61_v16, %v2299_v13  ;;  %v76_v30 = vrot.slane %v62_v27, %v2299_v13  ;;  %v137_v42 = vrot.slane %v129_v39, %v2299_v13  ;;  %v144_v52 = vrot.slane %v130_v49, %v2299_v13 }
  0x93   :  { %v77_v20 = vcombine.low %v53_v17, %v69_v18  ;;  %v78_v24 = vcombine.high %v53_v17, %v69_v18  ;;  %v93_v31 = vcombine.low %v60_v29, %v76_v30  ;;  %v94_v35 = vcombine.high %v60_v29, %v76_v30 }
  0x94   :  { %v145_v43 = vcombine.low %v121_v41, %v137_v42  ;;  %v146_v46 = vcombine.high %v121_v41, %v137_v42  ;;  %v161_v53 = vcombine.low %v128_v51, %v144_v52  ;;  %v162_v56 = vcombine.high %v128_v51, %v144_v52 }
  0x95   :  { %v85_v21 = vrot.slane %v77_v20, %v2303_v19  ;;  %v92_v25 = vrot.slane %v78_v24, %v2303_v19  ;;  %v101_v32 = vrot.slane %v93_v31, %v2303_v19  ;;  %v108_v37 = vrot.slane %v94_v35, %v2303_v19 }
  0x96   :  { %v153_v44 = vrot.slane %v145_v43, %v2303_v19  ;;  %v160_v47 = vrot.slane %v146_v46, %v2303_v19  ;;  %v169_v54 = vrot.slane %v161_v53, %v2303_v19  ;;  %v176_v57 = vrot.slane %v162_v56, %v2303_v19 }
  0x97   :  { %181 = vxpose.xlu0.b32.start.end [1/1] (short) (narrow) %v85_v21, 32  ;;  %v109_v23 = vcombine.high %v85_v21, %v2234_v22  ;;  %v110_v28 = vcombine.high %v92_v25, %v2234_v22  ;;  %v111_v33 = vcombine.high %v101_v32, %v2234_v22  ;;  %v112_v40 = vcombine.high %v108_v37, %v2234_v22 }
  0x98   :  { %v177_v45 = vcombine.high %v153_v44, %v2234_v22  ;;  %v178_v50 = vcombine.high %v160_v47, %v2234_v22  ;;  %v179_v55 = vcombine.high %v169_v54, %v2234_v22  ;;  %v180_v58 = vcombine.high %v176_v57, %v2234_v22 }
  0x99   :  { %213 = vxpose.xlu1.b32.start.end [1/1] (short) (narrow) %v109_v23, 32 }
  0xa4   :  { %245 = vxpose.xlu0.b32.start.end [1/1] (short) (narrow) %v92_v25, 32 }
  0xa6   :  { %277 = vxpose.xlu1.b32.start.end [1/1] (short) (narrow) %v110_v28, 32 }
  0xb1   :  { %309 = vxpose.xlu0.b32.start.end [1/1] (short) (narrow) %v101_v32, 32 }
  0xb3   :  { %341 = vxpose.xlu1.b32.start.end [1/1] (short) (narrow) %v111_v33, 32 }
  0xbe   :  { %373 = vxpose.xlu0.b32.start.end [1/1] (short) (narrow) %v108_v37, 32 }
  0xc0   :  { %405 = vxpose.xlu1.b32.start.end [1/1] (short) (narrow) %v112_v40, 32 }
  0xcb   :  { %437 = vxpose.xlu0.b32.start.end [1/1] (short) (narrow) %v153_v44, 32 }
  0xcd   :  { %469 = vxpose.xlu1.b32.start.end [1/1] (short) (narrow) %v177_v45, 32 }
  0xd8   :  { %501 = vxpose.xlu0.b32.start.end [1/1] (short) (narrow) %v160_v47, 32 }
  0xda   :  { %533 = vxpose.xlu1.b32.start.end [1/1] (short) (narrow) %v178_v50, 32 }
  0xe5   :  { %565 = vxpose.xlu0.b32.start.end [1/1] (short) (narrow) %v169_v54, 32 }
  0xe7   :  { %597 = vxpose.xlu1.b32.start.end [1/1] (short) (narrow) %v179_v55, 32 }
  0xf2   :  { %629 = vxpose.xlu0.b32.start.end [1/1] (short) (narrow) %v176_v57, 32 }
  0xf4   :  { %661 = vxpose.xlu1.b32.start.end [1/1] (short) (narrow) %v180_v58, 32 }
 0x117   :  { %v2321_v59 = vpop.trf.xlu0 }
 0x119   :  { %v229_v60 = vpop.trf.xlu1 }
 0x11b   :  { %v2323_v61 = vpop.trf.xlu0 }
 0x11d   :  { %v2325_v62 = vpop.trf.xlu1 }
 0x11f   :  { %v2327_v63 = vpop.trf.xlu0 }
 0x121   :  { %v2329_v0 = vpop.trf.xlu1 }
 0x123   :  { %v2331_v1 = vpop.trf.xlu0 }
 0x125   :  { %v2333_v2 = vpop.trf.xlu1 }
 0x127   :  { %v261_v3 = vpop.trf.xlu0 }
 0x128   :  { %v693_v24 = vcombine.low %v2321_v59, %v261_v3  ;;  %v694_v45 = vcombine.high %v2321_v59, %v261_v3 }
 0x129   :  { %v293_v4 = vpop.trf.xlu1 }
 0x12a   :  { %v709_v21 = vcombine.low %v229_v60, %v293_v4  ;;  %v701_v31 = vrot.slane %v693_v24, %v2299_v13  ;;  %v710_v39 = vcombine.high %v229_v60, %v293_v4 }
 0x12b   :  { %v2335_v5 = vpop.trf.xlu0 }
 0x12c   :  { %v717_v27 = vrot.slane %v709_v21, %v2299_v13  ;;  %v724_v52 = vrot.slane %v710_v39, %v2299_v13 }
 0x12d   :  { %v2337_v6 = vpop.trf.xlu1 }
 0x12e   :  { %v757_v34 = vcombine.low %v701_v31, %v717_v27  ;;  %v758_v44 = vcombine.high %v701_v31, %v717_v27  ;;  %v982_v31 = vcombine.high %v2325_v62, %v2337_v6 }
 0x12f   :  { %v2339_v7 = vpop.trf.xlu0 }
 0x130   :  { %v2377_v47 = vrot.slane %v757_v34, %v2303_v19  ;;  %v772_v60 = vrot.slane %v758_v44, %v2303_v19 }
 0x131   :  { %v2341_v8 = vpop.trf.xlu1 }
 0x132   :  { %3075 = vst [vmem:[#allocation9_spill] sm:$0xff] %v2377_v47 }
 0x133   :  { %v2343_v9 = vpop.trf.xlu0 }
 0x135   :  { %v2345_v10 = vpop.trf.xlu1 }
 0x137   :  { %v325_v11 = vpop.trf.xlu0 }
 0x139   :  { %v357_v12 = vpop.trf.xlu1 }
 0x13b   :  { %v2347_v14 = vpop.trf.xlu0 }
 0x13d   :  { %v2349_v15 = vpop.trf.xlu1 }
 0x13f   :  { %v2351_v16 = vpop.trf.xlu0 }
 0x141   :  { %v2353_v17 = vpop.trf.xlu1 }
 0x143   :  { %v328_v18 = vpop.trf.xlu0 }
 0x145   :  { %v360_v20 = vpop.trf.xlu1 }
 0x147   :  { %v389_v22 = vpop.trf.xlu0 }
 0x148   :  { %v725_v23 = vcombine.low %v325_v11, %v389_v22  ;;  %v726_v42 = vcombine.high %v325_v11, %v389_v22 }
 0x149   :  { %v421_v25 = vpop.trf.xlu1 }
 0x14a   :  { %v741_v26 = vcombine.low %v357_v12, %v421_v25  ;;  %v733_v29 = vrot.slane %v725_v23, %v2299_v13  ;;  %v742_v36 = vcombine.high %v357_v12, %v421_v25  ;;  %v740_v57 = vrot.slane %v726_v42, %v2299_v13 }
 0x14b   :  { %v2357_v28 = vpop.trf.xlu0  ;;  %v708_v12 = vrot.slane %v694_v45, %v2299_v13 }
 0x14c   :  { %v749_v30 = vrot.slane %v741_v26, %v2299_v13  ;;  %v756_v48 = vrot.slane %v742_v36, %v2299_v13 }
 0x14d   :  { %v2362_v32 = vpop.trf.xlu1 }
 0x14e   :  { %v789_v33 = vcombine.low %v733_v29, %v749_v30  ;;  %v790_v38 = vcombine.high %v733_v29, %v749_v30  ;;  %v1013_v42 = vcombine.low %v2349_v15, %v2362_v32 }
 0x14f   :  { %v2364_v35 = vpop.trf.xlu0 }
 0x150   :  { %v1270_v37 = vcombine.high %v2351_v16, %v2364_v35  ;;  %v2371_v41 = vrot.slane %v789_v33, %v2303_v19  ;;  %v804_v51 = vrot.slane %v790_v38, %v2303_v19 }
 0x151   :  { %v2368_v40 = vpop.trf.xlu1 }
 0x152   :  { %3074 = vst [vmem:[#allocation8_spill] sm:$0xff] %v2371_v41  ;;  %v1286_v43 = vcombine.high %v2353_v17, %v2368_v40  ;;  %v2381_v49 = vrot.slane %v1270_v37, %v2299_v13  ;;  %v822_v55 = vcombine.high %v2377_v47, %v2371_v41  ;;  %v823_v21 = vcombine.low %v772_v60, %v804_v51 }
 0x153   :  { %v392_v46 = vpop.trf.xlu0  ;;  %v824_v34 = vcombine.high %v772_v60, %v804_v51  ;;  %v997_v51 = vcombine.low %v2347_v14, %v2357_v28  ;;  %v1285_v27 = vcombine.low %v2353_v17, %v2368_v40  ;;  %v1254_v17 = vcombine.high %v2329_v0, %v2341_v8 }
 0x154   :  { %v2384_v50 = vrot.slane %v1286_v43, %v2299_v13  ;;  %v1541_v53 = vcombine.low %v328_v18, %v392_v46  ;;  %v1542_v54 = vcombine.high %v328_v18, %v392_v46  ;;  %1783 = vrot.lane.b32.xlu0 %v822_v55, %s2235_s0  ;;  %v805_v18 = vcombine.low %v740_v57, %v756_v48 }
 0x155   :  { %v424_v56 = vpop.trf.xlu1  ;;  %v806_v43 = vcombine.high %v740_v57, %v756_v48  ;;  %v981_v46 = vcombine.low %v2325_v62, %v2337_v6  ;;  %v965_v48 = vcombine.low %v2323_v61, %v2335_v5 }
 0x156   :  { %v1349_v58 = vcombine.low %v2381_v49, %v2384_v50  ;;  %v1557_v3 = vcombine.low %v360_v20, %v424_v56  ;;  %v1558_v4 = vcombine.high %v360_v20, %v424_v56  ;;  %v2401_v22 = vrot.slane %v1541_v53, %v2299_v13 }
 0x157   :  { %v2397_v11 = vpop.trf.xlu0  ;;  %v2404_v23 = vrot.slane %v1542_v54, %v2299_v13  ;;  %v773_v20 = vcombine.low %v708_v12, %v724_v52  ;;  %v813_v37 = vrot.slane %v805_v18, %v2303_v19  ;;  %v774_v54 = vcombine.high %v708_v12, %v724_v52 }
 0x158   :  { %v2407_v24 = vrot.slane %v1557_v3, %v2299_v13  ;;  %v2410_v25 = vrot.slane %v1558_v4, %v2299_v13  ;;  %1791 = vrot.lane.b32.xlu0 %v823_v21, %s2228_s17  ;;  %v1021_v56 = vrot.slane %v1013_v42, %v2299_v13  ;;  %v820_v3 = vrot.slane %v806_v43, %v2303_v19 }
 0x159   :  { %v2412_v26 = vpop.trf.xlu1  ;;  %v781_v39 = vrot.slane %v773_v20, %v2303_v19  ;;  %v989_v4 = vrot.slane %v981_v46, %v2299_v13  ;;  %v1005_v18 = vrot.slane %v997_v51, %v2299_v13  ;;  %v788_v12 = vrot.slane %v774_v54, %v2303_v19 }
 0x15a   :  { %v973_v21 = vrot.slane %v965_v48, %v2299_v13  ;;  %v1014_v42 = vcombine.high %v2349_v15, %v2362_v32  ;;  %v966_v48 = vcombine.high %v2323_v61, %v2335_v5  ;;  %v998_v32 = vcombine.high %v2347_v14, %v2357_v28 }
 0x15b   :  { %v454_v33 = vpop.trf.xlu0  ;;  %v825_v44 = vcombine.low %v781_v39, %v813_v37  ;;  %v826_v57 = vcombine.high %v781_v39, %v813_v37  ;;  %v1061_v20 = vcombine.low %v1005_v18, %v1021_v56  ;;  %v828_v54 = vcombine.high %v788_v12, %v820_v3 }
 0x15c   :  { %1799 = vrot.lane.b32.xlu0 %v824_v34, %s2236_s23  ;;  %v827_v34 = vcombine.low %v788_v12, %v820_v3  ;;  %v1029_v39 = vcombine.low %v973_v21, %v989_v4  ;;  %v1030_v30 = vcombine.high %v973_v21, %v989_v4 }
 0x15d   :  { %v486_v36 = vpop.trf.xlu1  ;;  %v1069_v51 = vrot.slane %v1061_v20, %v2303_v19 }
 0x15e   :  { %v1037_v15 = vrot.slane %v1029_v39, %v2303_v19 }
 0x15f   :  { %v455_v38 = vpop.trf.xlu0 }
 0x160   :  { %1807 = vrot.lane.b32.xlu0 %v825_v44, %s2237_s24  ;;  %v1062_v44 = vcombine.high %v1005_v18, %v1021_v56  ;;  %v2466_v56 = vrot.slane %v1014_v42, %v2299_v13  ;;  %v1093_v5 = vcombine.low %v1037_v15, %v1069_v51 }
 0x161   :  { %v2428_v45 = vpop.trf.xlu1 }
 0x162   :  { %v1076_v62 = vrot.slane %v1062_v44, %v2303_v19 }
 0x163   :  { %v2437_v55 = vpop.trf.xlu0 }
 0x164   :  { %1815 = vrot.lane.b32.xlu0 %v826_v57, %s2238_s25 }
 0x165   :  { %v2442_v60 = vpop.trf.xlu1 }
 0x167   :  { %v2448_v52 = vpop.trf.xlu0 }
 0x168   :  { %1823 = vrot.lane.b32.xlu0 %v827_v34, %s2239_s26 }
 0x169   :  { %v2452_v37 = vpop.trf.xlu1 }
 0x16b   :  { %v518_v43 = vpop.trf.xlu0 }
 0x16c   :  { %v1102_v46 = vcombine.high %v454_v33, %v518_v43  ;;  %v1101_v57 = vcombine.low %v454_v33, %v518_v43  ;;  %1831 = vrot.lane.b32.xlu0 %v828_v54, %s2240_s27 }
 0x16d   :  { %v550_v53 = vpop.trf.xlu1 }
 0x16e   :  { %v1117_v33 = vcombine.low %v486_v36, %v550_v53  ;;  %v1118_v3 = vcombine.high %v486_v36, %v550_v53  ;;  %v2471_v6 = vrot.slane %v1101_v57, %v2299_v13  ;;  %v2474_v4 = vrot.slane %v1102_v46, %v2299_v13 }
 0x16f   :  { %v519_v18 = vpop.trf.xlu0 }
 0x170   :  { %v1373_v12 = vcombine.low %v455_v38, %v519_v18  ;;  %v1374_v61 = vcombine.high %v455_v38, %v519_v18  ;;  %v2477_v14 = vrot.slane %v1117_v33, %v2299_v13  ;;  %v2480_v28 = vrot.slane %v1118_v3, %v2299_v13  ;;  %1839 = vrot.lane.b32.xlu0 %v1093_v5, %s2231_s22 }
 0x171   :  { %v551_v21 = vpop.trf.xlu1  ;;  %v2508_v33 = vrot.slane %v982_v31, %v2299_v13  ;;  %v1012_v3 = vrot.slane %v998_v32, %v2299_v13  ;;  %v1094_v18 = vcombine.high %v1037_v15, %v1069_v51  ;;  %v980_v15 = vrot.slane %v966_v48, %v2299_v13 }
 0x172   :  { %v2483_v36 = vrot.slane %v1373_v12, %v2299_v13  ;;  %v2486_v38 = vrot.slane %v1374_v61, %v2299_v13  ;;  %v1389_v53 = vcombine.low %v2428_v45, %v551_v21  ;;  %v1390_v20 = vcombine.high %v2428_v45, %v551_v21 }
 0x173   :  { %v520_v44 = vpop.trf.xlu0  ;;  %v1044_v61 = vrot.slane %v1030_v30, %v2303_v19  ;;  %v1077_v32 = vcombine.low %v1012_v3, %v2466_v56  ;;  %v1046_v40 = vcombine.high %v980_v15, %v2508_v33 }
 0x174   :  { %v2500_v46 = vrot.slane %v1389_v53, %v2299_v13  ;;  %v2503_v45 = vrot.slane %v1390_v20, %v2299_v13  ;;  %v1645_v57 = vcombine.low %v2437_v55, %v520_v44  ;;  %v1646_v54 = vcombine.high %v2437_v55, %v520_v44  ;;  %1847 = vrot.lane.b32.xlu0 %v1094_v18, %s2241_s28 }
 0x175   :  { %v552_v12 = vpop.trf.xlu1  ;;  %v1095_v20 = vcombine.low %v1044_v61, %v1076_v62  ;;  %v1096_v39 = vcombine.high %v1044_v61, %v1076_v62  ;;  %v1085_v34 = vrot.slane %v1077_v32, %v2303_v19  ;;  %v1269_v62 = vcombine.low %v2351_v16, %v2364_v35 }
 0x176   :  { %v1661_v31 = vcombine.low %v2442_v60, %v552_v12  ;;  %v1662_v51 = vcombine.high %v2442_v60, %v552_v12  ;;  %v2528_v44 = vrot.slane %v1645_v57, %v2299_v13  ;;  %v2531_v43 = vrot.slane %v1646_v54, %v2299_v13 }
 0x177   :  { %v2523_v30 = vpop.trf.xlu0  ;;  %v1045_v12 = vcombine.low %v980_v15, %v2508_v33  ;;  %v1078_v54 = vcombine.high %v1012_v3, %v2466_v56  ;;  %v1238_v16 = vcombine.high %v2327_v63, %v2339_v7  ;;  %v845_v35 = vcombine.low %v2412_v26, %v2452_v37 }
 0x178   :  { %v2534_v42 = vrot.slane %v1661_v31, %v2299_v13  ;;  %v2537_v18 = vrot.slane %v1662_v51, %v2299_v13  ;;  %1855 = vrot.lane.b32.xlu0 %v1095_v20, %s2242_s29  ;;  %v1253_v20 = vcombine.low %v2329_v0, %v2341_v8  ;;  %v1277_v8 = vrot.slane %v1269_v62, %v2299_v13 }
 0x179   :  { %v2539_v60 = vpop.trf.xlu1  ;;  %v1053_v31 = vrot.slane %v1045_v12, %v2303_v19  ;;  %v1293_v12 = vrot.slane %v1285_v27, %v2299_v13  ;;  %v1092_v27 = vrot.slane %v1078_v54, %v2303_v19  ;;  %v2588_v15 = vrot.slane %v1254_v17, %v2299_v13 }
 0x17a   :  { %v1261_v0 = vrot.slane %v1253_v20, %v2299_v13  ;;  %v846_v57 = vcombine.high %v2412_v26, %v2452_v37  ;;  %v2598_v54 = vrot.slane %v1238_v16, %v2299_v13  ;;  %v853_v20 = vrot.slane %v845_v35, %v2299_v13 }
 0x17b   :  { %v2551_v51 = vpop.trf.xlu0  ;;  %v1097_v61 = vcombine.low %v1053_v31, %v1085_v34  ;;  %v1098_v33 = vcombine.high %v1053_v31, %v1085_v34  ;;  %v1060_v31 = vrot.slane %v1046_v40, %v2303_v19  ;;  %v1334_v48 = vcombine.high %v1277_v8, %v1293_v12 }
 0x17c   :  { %1863 = vrot.lane.b32.xlu0 %v1096_v39, %s2243_s30  ;;  %v1237_v39 = vcombine.low %v2327_v63, %v2339_v7  ;;  %v1333_v7 = vcombine.low %v1277_v8, %v1293_v12  ;;  %v2610_v35 = vrot.slane %v846_v57, %v2299_v13 }
 0x17d   :  { %v2553_v29 = vpop.trf.xlu1  ;;  %v1099_v55 = vcombine.low %v1060_v31, %v1092_v27  ;;  %v1100_v57 = vcombine.high %v1060_v31, %v1092_v27 }
 0x17e   :  { %v1245_v63 = vrot.slane %v1237_v39, %v2299_v13  ;;  %v830_v39 = vcombine.high %v2397_v11, %v2448_v52  ;;  %v1341_v53 = vrot.slane %v1333_v7, %v2303_v19 }
 0x17f   :  { %v2559_v59 = vpop.trf.xlu0 }
 0x180   :  { %1871 = vrot.lane.b32.xlu0 %v1097_v61, %s2244_s2  ;;  %v829_v61 = vcombine.low %v2397_v11, %v2448_v52  ;;  %v1301_v17 = vcombine.low %v1245_v63, %v1261_v0  ;;  %v1302_v37 = vcombine.high %v1245_v63, %v1261_v0  ;;  %v2623_v63 = vrot.slane %v830_v39, %v2299_v13 }
 0x181   :  { %v2567_v32 = vpop.trf.xlu1  ;;  %v2632_v11 = vrot.slane %v1349_v58, %v2303_v19 }
 0x182   :  { %v837_v40 = vrot.slane %v829_v61, %v2299_v13  ;;  %v2620_v61 = vrot.slane %v1334_v48, %v2303_v19  ;;  %v909_v27 = vcombine.low %v2623_v63, %v2610_v35 }
 0x183   :  { %v2576_v56 = vpop.trf.xlu0 }
 0x184   :  { %1879 = vrot.lane.b32.xlu0 %v1098_v33, %s2245_s3  ;;  %v1317_v33 = vcombine.low %v2598_v54, %v2588_v15  ;;  %v893_v52 = vcombine.low %v837_v40, %v853_v20  ;;  %v894_v21 = vcombine.high %v837_v40, %v853_v20 }
 0x185   :  { %v2584_v3 = vpop.trf.xlu1 }
 0x186   :  { %v2638_v48 = vrot.slane %v1317_v33, %v2303_v19  ;;  %v2645_v58 = vrot.slane %v893_v52, %v2303_v19 }
 0x187   :  { %v645_v34 = vpop.trf.xlu0 }
 0x188   :  { %v861_v62 = vcombine.low %v2523_v30, %v645_v34  ;;  %1887 = vrot.lane.b32.xlu0 %v1099_v55, %s2246_s4  ;;  %v1309_v55 = vrot.slane %v1301_v17, %v2303_v19  ;;  %v862_v31 = vcombine.high %v2523_v30, %v645_v34 }
 0x189   :  { %v677_v26 = vpop.trf.xlu1 }
 0x18a   :  { %v877_v16 = vcombine.low %v2539_v60, %v677_v26  ;;  %v869_v0 = vrot.slane %v861_v62, %v2299_v13  ;;  %v1365_v39 = vcombine.low %v1309_v55, %v1341_v53  ;;  %v1366_v47 = vcombine.high %v1309_v55, %v1341_v53 }
 0x18b   :  { %v2613_v12 = vpop.trf.xlu0  ;;  %v3076_v53 = vcombine.low %v2483_v36, %v2500_v46 }
 0x18c   :  { %v885_v8 = vrot.slane %v877_v16, %v2299_v13  ;;  %v2635_v16 = vrot.slane %v1302_v37, %v2303_v19  ;;  %1895 = vrot.lane.b32.xlu0 %v1100_v57, %s2247_s5  ;;  %v878_v37 = vcombine.high %v2539_v60, %v677_v26 }
 0x18d   :  { %v2625_v7 = vpop.trf.xlu1  ;;  %v2666_v52 = vrot.slane %v3076_v53, %v2303_v19 }
 0x18e   :  { %v925_v62 = vcombine.low %v869_v0, %v885_v8  ;;  %v1367_v30 = vcombine.low %v2635_v16, %v2620_v61  ;;  %v926_v34 = vcombine.high %v869_v0, %v885_v8  ;;  %v1368_v57 = vcombine.high %v2635_v16, %v2620_v61 }
 0x18f   :  { %v647_v17 = vpop.trf.xlu0  ;;  %v2669_v0 = vrot.slane %v862_v31, %v2299_v13  ;;  %v908_v61 = vrot.slane %v894_v21, %v2303_v19  ;;  %v2677_v55 = vrot.slane %v878_v37, %v2299_v13 }
 0x190   :  { %v2649_v5 = vrot.slane %v925_v62, %v2303_v19  ;;  %v1405_v33 = vcombine.low %v2559_v59, %v647_v17  ;;  %v1406_v40 = vcombine.high %v2559_v59, %v647_v17  ;;  %1903 = vrot.lane.b32.xlu0 %v1365_v39, %s2229_s20  ;;  %v2674_v59 = vrot.slane %v909_v27, %v2303_v19 }
 0x191   :  { %v679_v41 = vpop.trf.xlu1  ;;  %v940_v27 = vrot.slane %v926_v34, %v2303_v19 }
 0x192   :  { %v1421_v60 = vcombine.low %v2567_v32, %v679_v41  ;;  %v1413_v62 = vrot.slane %v1405_v33, %v2299_v13  ;;  %v1422_v16 = vcombine.high %v2567_v32, %v679_v41  ;;  %v958_v39 = vcombine.high %v2645_v58, %v2649_v5 }
 0x193   :  { %v648_v8 = vpop.trf.xlu0  ;;  %v1420_v20 = vrot.slane %v1406_v40, %v2299_v13  ;;  %v3077_v41 = vcombine.high %v2483_v36, %v2500_v46  ;;  %v3078_v40 = vcombine.low %v2486_v38, %v2503_v45  ;;  %v941_v36 = vcombine.low %v2669_v0, %v2677_v55 }
 0x194   :  { %v1429_v17 = vrot.slane %v1421_v60, %v2299_v13  ;;  %v1677_v31 = vcombine.low %v2576_v56, %v648_v8  ;;  %v1678_v53 = vcombine.high %v2576_v56, %v648_v8  ;;  %v1436_v37 = vrot.slane %v1422_v16, %v2299_v13  ;;  %1911 = vrot.lane.b32.xlu0 %v1366_v47, %s2248_s6 }
 0x195   :  { %v680_v21 = vpop.trf.xlu1  ;;  %v2693_v32 = vrot.slane %v3077_v41, %v2303_v19  ;;  %1785 = vrot.lane.b32.xlu1 %v958_v39, %s2235_s0  ;;  %v2703_v60 = vrot.slane %v3078_v40, %v2303_v19  ;;  %s2261_s0 = smov 124  }
 0x196   :  { %v1469_v26 = vcombine.low %v1413_v62, %v1429_v17  ;;  %v1470_v33 = vcombine.high %v1413_v62, %v1429_v17  ;;  %v1693_v56 = vcombine.low %v2584_v3, %v680_v21  ;;  %v1694_v34 = vcombine.high %v2584_v3, %v680_v21 }
 0x197   :  { %v1485_v46 = vcombine.low %v1420_v20, %v1436_v37  ;;  %v1486_v8 = vcombine.high %v1420_v20, %v1436_v37  ;;  %v1685_v62 = vrot.slane %v1677_v31, %v2299_v13  ;;  %v1692_v47 = vrot.slane %v1678_v53, %v2299_v13 }
 0x198   :  { %v1701_v16 = vrot.slane %v1693_v56, %v2299_v13  ;;  %v1708_v17 = vrot.slane %v1694_v34, %v2299_v13  ;;  %v3079_v3 = vcombine.high %v2486_v38, %v2503_v45  ;;  %v2718_v21 = vrot.slane %v1469_v26, %v2303_v19  ;;  %1919 = vrot.lane.b32.xlu0 %v1367_v30, %s2249_s7 }
 0x199   :  { %v2721_v41 = vrot.slane %v1470_v33, %v2303_v19  ;;  %v959_v20 = vcombine.low %v908_v61, %v940_v27  ;;  %v3080_v38 = vcombine.low %v2528_v44, %v2534_v42  ;;  %v3081_v26 = vcombine.high %v2528_v44, %v2534_v42 }
 0x19a   :  { %v2715_v39 = vrot.slane %v3079_v3, %v2303_v19  ;;  %v1741_v31 = vcombine.low %v1685_v62, %v1701_v16  ;;  %v1742_v37 = vcombine.high %v1685_v62, %v1701_v16  ;;  %v1757_v53 = vcombine.low %v1692_v47, %v1708_v17 }
 0x19b   :  { %v1758_v40 = vcombine.high %v1692_v47, %v1708_v17  ;;  %v2728_v45 = vrot.slane %v3080_v38, %v2303_v19  ;;  %v2734_v33 = vrot.slane %v3081_v26, %v2303_v19  ;;  %v2737_v56 = vrot.slane %v1485_v46, %v2303_v19  ;;  %1793 = vrot.lane.b32.xlu1 %v959_v20, %s2228_s17 }
 0x19c   :  { %v2740_v34 = vrot.slane %v1486_v8, %v2303_v19  ;;  %v3082_v30 = vcombine.low %v2531_v43, %v2537_v18  ;;  %v3083_v42 = vcombine.high %v2531_v43, %v2537_v18  ;;  %v2756_v46 = vrot.slane %v1741_v31, %v2303_v19  ;;  %1927 = vrot.lane.b32.xlu0 %v1368_v57, %s2250_s8 }
 0x19d   :  { %v949_v8 = vrot.slane %v941_v36, %v2303_v19  ;;  %v942_v47 = vcombine.high %v2669_v0, %v2677_v55  ;;  %v2762_v16 = vrot.slane %v1742_v37, %v2303_v19  ;;  %v2765_v17 = vrot.slane %v1757_v53, %v2303_v19 }
 0x19e   :  { %v2747_v62 = vrot.slane %v3082_v30, %v2303_v19  ;;  %v2753_v44 = vrot.slane %v3083_v42, %v2303_v19  ;;  %v960_v3 = vcombine.high %v908_v61, %v940_v27  ;;  %v2768_v20 = vrot.slane %v1758_v40, %v2303_v19 }
 0x19f   :  { %v1501_v43 = vcombine.low %v2666_v52, %v2718_v21  ;;  %v1502_v18 = vcombine.high %v2666_v52, %v2718_v21  ;;  %v1503_v0 = vcombine.low %v2693_v32, %v2721_v41  ;;  %v1504_v61 = vcombine.high %v2693_v32, %v2721_v41 }
 0x1a0   :  { %1801 = vrot.lane.b32.xlu1 %v960_v3, %s2236_s23  ;;  %v1505_v55 = vcombine.low %v2703_v60, %v2737_v56  ;;  %v1506_v57 = vcombine.high %v2703_v60, %v2737_v56  ;;  %v1149_v36 = vcombine.low %v2553_v29, %v2625_v7  ;;  %v961_v31 = vcombine.low %v2674_v59, %v949_v8 }
 0x1a1   :  { %v1525_v42 = vcombine.low %v2333_v2, %v2345_v10  ;;  %v3084_v3 = vcombine.low %v2638_v48, %v2632_v11  ;;  %v910_v30 = vcombine.high %v2623_v63, %v2610_v35  ;;  %v1133_v53 = vcombine.low %v2551_v51, %v2613_v12 }
 0x1a2   :  { %v3085_v40 = vcombine.high %v2381_v49, %v2384_v50  ;;  %v1370_v38 = vcombine.high %v2638_v48, %v2632_v11  ;;  %v1157_v26 = vrot.slane %v1149_v36, %v2299_v13  ;;  %v962_v35 = vcombine.high %v2674_v59, %v949_v8 }
 0x1a3   :  { %1935 = vrot.lane.b32.xlu0 %v3084_v3, %s2251_s9  ;;  %v1509_v3 = vcombine.low %v2331_v1, %v2343_v9  ;;  %v956_v63 = vrot.slane %v942_v47, %v2303_v19  ;;  %v1533_v27 = vrot.slane %v1525_v42, %v2299_v13  ;;  %v1141_v50 = vrot.slane %v1133_v53, %v2299_v13 }
 0x1a4   :  { %1809 = vrot.lane.b32.xlu1 %v961_v31, %s2237_s24  ;;  %v1364_v37 = vrot.slane %v3085_v40, %v2303_v19  ;;  %v3086_v31 = vcombine.high %v2598_v54, %v2588_v15  ;;  %v924_v11 = vrot.slane %v910_v30, %v2303_v19  ;;  %v3087_v15 = vcombine.low %v2401_v22, %v2407_v24 }
 0x1a5   :  { %v1517_v48 = vrot.slane %v1509_v3, %v2299_v13  ;;  %v1197_v8 = vcombine.low %v1141_v50, %v1157_v26  ;;  %v3088_v42 = vcombine.low %v2471_v6, %v2477_v14  ;;  %v3100_v60 = vcombine.low %v2728_v45, %v2756_v46 }
 0x1a6   :  { %v1332_v49 = vrot.slane %v3086_v31, %v2303_v19  ;;  %v963_v47 = vcombine.low %v924_v11, %v956_v63  ;;  %v1613_v54 = vrot.slane %v3087_v15, %v2303_v19  ;;  %v964_v40 = vcombine.high %v924_v11, %v956_v63 }
 0x1a7   :  { %1943 = vrot.lane.b32.xlu0 %v1370_v38, %s2252_s10  ;;  %v1573_v36 = vcombine.low %v1517_v48, %v1533_v27  ;;  %v1205_v38 = vrot.slane %v1197_v8, %v2303_v19  ;;  %v1173_v3 = vrot.slane %v3088_v42, %v2303_v19  ;;  %v1150_v31 = vcombine.high %v2553_v29, %v2625_v7 }
 0x1a8   :  { %1817 = vrot.lane.b32.xlu1 %v962_v35, %s2238_s25  ;;  %v1371_v59 = vcombine.low %v1332_v49, %v1364_v37  ;;  %v1372_v53 = vcombine.high %v1332_v49, %v1364_v37  ;;  %v1198_v37 = vcombine.high %v1141_v50, %v1157_v26  ;;  %v1526_v49 = vcombine.high %v2333_v2, %v2345_v10 }
 0x1a9   :  { %v1581_v30 = vrot.slane %v1573_v36, %v2303_v19  ;;  %v1229_v63 = vcombine.low %v1173_v3, %v1205_v38  ;;  %v1574_v11 = vcombine.high %v1517_v48, %v1533_v27  ;;  %v1510_v8 = vcombine.high %v2331_v1, %v2343_v9 }
 0x1aa   :  { %v3089_v29 = vcombine.high %v2401_v22, %v2407_v24  ;;  %v1164_v50 = vrot.slane %v1150_v31, %v2299_v13  ;;  %v1230_v2 = vcombine.high %v1173_v3, %v1205_v38  ;;  %v1212_v10 = vrot.slane %v1198_v37, %v2303_v19 }
 0x1ab   :  { %1951 = vrot.lane.b32.xlu0 %v1371_v59, %s2253_s11  ;;  %v1637_v35 = vcombine.low %v1581_v30, %v1613_v54  ;;  %v1134_v59 = vcombine.high %v2551_v51, %v2613_v12  ;;  %v1638_v26 = vcombine.high %v1581_v30, %v1613_v54  ;;  %v1540_v27 = vrot.slane %v1526_v49, %v2299_v13 }
 0x1ac   :  { %1825 = vrot.lane.b32.xlu1 %v963_v47, %s2239_s26  ;;  %v1620_v7 = vrot.slane %v3089_v29, %v2303_v19  ;;  %v1588_v51 = vrot.slane %v1574_v11, %v2303_v19  ;;  %v3090_v9 = vcombine.high %v2471_v6, %v2477_v14  ;;  %v1524_v24 = vrot.slane %v1510_v8, %v2299_v13 }
 0x1ad   :  { %v1148_v1 = vrot.slane %v1134_v59, %v2299_v13  ;;  %v3091_v15 = vcombine.low %v2404_v23, %v2410_v25  ;;  %v3092_v14 = vcombine.low %v2474_v4, %v2480_v28  ;;  %v3093_v31 = vcombine.high %v2404_v23, %v2410_v25  ;;  %v3095_v25 = vld [vmem:[#allocation9_spill] sm:$0xff] }
 0x1ae   :  { %v1180_v22 = vrot.slane %v3090_v9, %v2303_v19  ;;  %v1639_v12 = vcombine.low %v1588_v51, %v1620_v7  ;;  %v1589_v36 = vcombine.low %v1524_v24, %v1540_v27  ;;  %v3094_v8 = vcombine.high %v2474_v4, %v2480_v28 }
 0x1af   :  { %1959 = vrot.lane.b32.xlu0 %v1372_v53, %s2254_s12  ;;  %v1213_v48 = vcombine.low %v1148_v1, %v1164_v50  ;;  %v1629_v54 = vrot.slane %v3091_v15, %v2303_v19  ;;  %v1640_v53 = vcombine.high %v1588_v51, %v1620_v7  ;;  %v1189_v38 = vrot.slane %v3092_v14, %v2303_v19 }
 0x1b0   :  { %1833 = vrot.lane.b32.xlu1 %v964_v40, %s2240_s27  ;;  %v1231_v47 = vcombine.low %v1180_v22, %v1212_v10  ;;  %v1232_v40 = vcombine.high %v1180_v22, %v1212_v10  ;;  %v1597_v13 = vrot.slane %v1589_v36, %v2303_v19  ;;  %v1214_v42 = vcombine.high %v1148_v1, %v1164_v50 }
 0x1b1   :  { %v1221_v6 = vrot.slane %v1213_v48, %v2303_v19  ;;  %v1636_v37 = vrot.slane %v3093_v31, %v2303_v19  ;;  %v1196_v29 = vrot.slane %v3094_v8, %v2303_v19  ;;  %v3106_v14 = vcombine.low %v2645_v58, %v2649_v5 }
 0x1b2   :  { %v1641_v30 = vcombine.low %v1597_v13, %v1629_v54  ;;  %v1228_v11 = vrot.slane %v1214_v42, %v2303_v19 }
 0x1b3   :  { %1967 = vrot.lane.b32.xlu0 %v1637_v35, %s2230_s21  ;;  %v1233_v3 = vcombine.low %v1189_v38, %v1221_v6  ;;  %v1590_v35 = vcombine.high %v1524_v24, %v1540_v27  ;;  %v1234_v49 = vcombine.high %v1189_v38, %v1221_v6 }
 0x1b4   :  { %1841 = vrot.lane.b32.xlu1 %v1229_v63, %s2231_s22  ;;  %v1642_v63 = vcombine.high %v1597_v13, %v1629_v54  ;;  %v1235_v10 = vcombine.low %v1196_v29, %v1228_v11  ;;  %s2260_s22 = smov 120   ;;  %v1236_v4 = vcombine.high %v1196_v29, %v1228_v11  ;;  %v3102_v54 = vcombine.low %v2734_v33, %v2762_v16 }
 0x1b5   :  { %v1604_v59 = vrot.slane %v1590_v35, %v2303_v19 }
 0x1b7   :  { %1975 = vrot.lane.b32.xlu0 %v1638_v26, %s2255_s13  ;;  %v1643_v23 = vcombine.low %v1604_v59, %v1636_v37  ;;  %v3096_v26 = vld [vmem:[#allocation8_spill] sm:$0xff]  ;;  %v1644_v51 = vcombine.high %v1604_v59, %v1636_v37 }
 0x1b8   :  { %1849 = vrot.lane.b32.xlu1 %v1230_v2, %s2241_s28  ;;  %v3097_v50 = vcombine.low %v3095_v25, %v3096_v26 }
 0x1bb   :  { %1983 = vrot.lane.b32.xlu0 %v1639_v12, %s2256_s14 }
 0x1bc   :  { %1857 = vrot.lane.b32.xlu1 %v1231_v47, %s2242_s29 }
 0x1bf   :  { %1991 = vrot.lane.b32.xlu0 %v1640_v53, %s2257_s15 }
 0x1c0   :  { %1865 = vrot.lane.b32.xlu1 %v1232_v40, %s2243_s30  ;;  %v3104_v40 = vcombine.low %v2747_v62, %v2765_v17 }
 0x1c3   :  { %1999 = vrot.lane.b32.xlu0 %v1641_v30, %s2258_s18 }
 0x1c4   :  { %1873 = vrot.lane.b32.xlu1 %v1233_v3, %s2244_s2 }
 0x1c6   :  { %v1784_v7 = vpop.permute.xlu0 %1783 }
 0x1c7   :  { %2007 = vrot.lane.b32.xlu0 %v1642_v63, %s2259_s19  ;;  %v2030_v2 = vsel %vm2029_vm0, %v3097_v50, %v1784_v7 }
 0x1c8   :  { %1881 = vrot.lane.b32.xlu1 %v1234_v49, %s2245_s3 }
 0x1ca   :  { %v1792_v27 = vpop.permute.xlu0 %1791 }
 0x1cb   :  { %2015 = vrot.lane.b32.xlu0 %v1643_v23, %s2260_s22  ;;  %v2033_v1 = vsel %vm2032_vm1, %v2030_v2, %v1792_v27 }
 0x1cc   :  { %1889 = vrot.lane.b32.xlu1 %v1235_v10, %s2246_s4 }
 0x1ce   :  { %v1800_v19 = vpop.permute.xlu0 %1799 }
 0x1cf   :  { %2023 = vrot.lane.b32.xlu0 %v1644_v51, %s2261_s0  ;;  %v2036_v28 = vsel %vm2035_vm2, %v2033_v1, %v1800_v19 }
 0x1d0   :  { %1897 = vrot.lane.b32.xlu1 %v1236_v4, %s2247_s5 }
 0x1d2   :  { %v1808_v9 = vpop.permute.xlu0 %1807 }
 0x1d3   :  { %v2039_v22 = vsel %vm2038_vm3, %v2036_v28, %v1808_v9 }
 0x1d4   :  { %1905 = vrot.lane.b32.xlu1 %v1501_v43, %s2229_s20  ;;  %s2262_s20 = smov [#allocation5]  }
 0x1d6   :  { %v1816_v24 = vpop.permute.xlu0 %1815 }
 0x1d7   :  { %v2042_v12 = vsel %vm2041_vm4, %v2039_v22, %v1816_v24 }
 0x1d8   :  { %1913 = vrot.lane.b32.xlu1 %v1502_v18, %s2248_s6 }
 0x1da   :  { %v1824_v48 = vpop.permute.xlu0 %1823 }
 0x1db   :  { %v2045_v43 = vsel %vm2044_vm5, %v2042_v12, %v1824_v48 }
 0x1dc   :  { %1921 = vrot.lane.b32.xlu1 %v1503_v0, %s2249_s7 }
 0x1de   :  { %v1832_v52 = vpop.permute.xlu0 %1831 }
 0x1df   :  { %v2048_v21 = vsel %vm2047_vm6, %v2045_v43, %v1832_v52 }
 0x1e0   :  { %1929 = vrot.lane.b32.xlu1 %v1504_v61, %s2250_s8  ;;  %v3098_v61 = vcombine.low %v2715_v39, %v2740_v34 }
 0x1e2   :  { %v1840_v18 = vpop.permute.xlu0 %1839 }
 0x1e3   :  { %v2051_v0 = vsel %vm2050_vm7, %v2048_v21, %v1840_v18 }
 0x1e4   :  { %1937 = vrot.lane.b32.xlu1 %v1505_v55, %s2251_s9  ;;  %v3099_v55 = vcombine.high %v2715_v39, %v2740_v34  ;;  %v3103_v34 = vcombine.high %v2734_v33, %v2762_v16  ;;  %v3107_v16 = vcombine.low %v2753_v44, %v2768_v20 }
 0x1e6   :  { %v1848_v32 = vpop.permute.xlu0 %1847 }
 0x1e7   :  { %v2054_v41 = vsel %vm2053_vm8, %v2051_v0, %v1848_v32 }
 0x1e8   :  { %1945 = vrot.lane.b32.xlu1 %v1506_v57, %s2252_s10  ;;  %v3101_v57 = vcombine.high %v2728_v45, %v2756_v46  ;;  %v3105_v46 = vcombine.high %v2747_v62, %v2765_v17  ;;  %v3108_v62 = vcombine.high %v2753_v44, %v2768_v20 }
 0x1ea   :  { %v1856_v47 = vpop.permute.xlu0 %1855 }
 0x1eb   :  { %v2057_v10 = vsel %vm2056_vm9, %v2054_v41, %v1856_v47 }
 0x1ec   :  { %1953 = vrot.lane.b32.xlu1 %v3098_v61, %s2253_s11 }
 0x1ee   :  { %v1864_v36 = vpop.permute.xlu0 %1863 }
 0x1ef   :  { %v2060_v51 = vsel %vm2059_vm10, %v2057_v10, %v1864_v36 }
 0x1f0   :  { %1961 = vrot.lane.b32.xlu1 %v3099_v55, %s2254_s12 }
 0x1f2   :  { %v1872_v56 = vpop.permute.xlu0 %1871 }
 0x1f3   :  { %v2063_v4 = vsel %vm2062_vm11, %v2060_v51, %v1872_v56 }
 0x1f4   :  { %1969 = vrot.lane.b32.xlu1 %v3100_v60, %s2230_s21  ;;  %s2129_s21 = sshll.u32 %s2262_s20, 4  ;;  %s2130_s21 = int_to_ptr.vmem [resolvable:$true] %s2129_s21 }
 0x1f5   :  { %s2200_s23 = scalar_lea.vmem %s2130_s21, 256  ;;  %p2205_p9 = scmp.lt.s32.totalorder %s2130_s21, %s2130_s21 }
 0x1f6   :  { %v1880_v15 = vpop.permute.xlu0 %1879  ;;  %p2201_p8 = scmp.ne.s32.totalorder %s2130_s21, %s2200_s23  ;;  %p2206_p10 = scmp.lt.s32.totalorder %s2200_s23, %s2200_s23 }
 0x1f7   :  { %v2066_v19 = vsel %vm2065_vm12, %v2063_v4, %v1880_v15 }
 0x1f8   :  { %1977 = vrot.lane.b32.xlu1 %v3101_v57, %s2255_s13  ;;  %p2207_p11 = por %p2206_p10, %p2205_p9 }
 0x1fa   :  { %v1888_v39 = vpop.permute.xlu0 %1887  ;;  %p2208_p12 = pnand %p2207_p11, %p2201_p8 }
 0x1fb   :  { %v2069_v28 = vsel %vm2068_vm13, %v2066_v19, %v1888_v39 }
 0x1fc   :  { %1985 = vrot.lane.b32.xlu1 %v3102_v54, %s2256_s14 }
 0x1fe   :  { %v1896_v53 = vpop.permute.xlu0 %1895 }
 0x1ff   :  { %v2072_v22 = vsel %vm2071_vm14, %v2069_v28, %v1896_v53 }
 0x200   :  { %1993 = vrot.lane.b32.xlu1 %v3103_v34, %s2257_s15 }
 0x202   :  { %v1904_v45 = vpop.permute.xlu0 %1903 }
 0x203   :  { %v2075_v12 = vsel %vm2074_vm15, %v2072_v22, %v1904_v45 }
 0x204   :  { %2001 = vrot.lane.b32.xlu1 %v3104_v40, %s2258_s18 }
 0x206   :  { %v1912_v6 = vpop.permute.xlu0 %1911 }
 0x207   :  { %v1786_v13 = vpop.permute.xlu1 %1785 }
 0x208   :  { %2009 = vrot.lane.b32.xlu1 %v3105_v46, %s2259_s19  ;;  %v2031_v33 = vsel %vm2029_vm0, %v3106_v14, %v1786_v13  ;;  %vm3065_vm0 = vcmask 556032  }
 0x209   :  { %v2078_v48 = vsel %vm3065_vm0, %v2075_v12, %v1912_v6  ;;  %vm2104_vm0 = vcmask 850944  }
 0x20a   :  { %v1920_v38 = vpop.permute.xlu0 %1919 }
 0x20c   :  { %2017 = vrot.lane.b32.xlu1 %v3107_v16, %s2260_s22 }
 0x20d   :  { %v1794_v30 = vpop.permute.xlu1 %1793 }
 0x20e   :  { %v2034_v42 = vsel %vm2032_vm1, %v2031_v33, %v1794_v30  ;;  %v1928_v17 = vpop.permute.xlu0 %1927  ;;  %vm3066_vm1 = vcmask 588800  }
 0x20f   :  { %v2081_v43 = vsel %vm3066_vm1, %v2078_v48, %v1920_v38  ;;  %vm2107_vm1 = vcmask 883712  }
 0x210   :  { %2025 = vrot.lane.b32.xlu1 %v3108_v62, %s2261_s0 }
 0x212   :  { %v1802_v3 = vpop.permute.xlu1 %1801 }
 0x213   :  { %v2037_v5 = vsel %vm2035_vm2, %v2034_v42, %v1802_v3  ;;  %vm3067_vm2 = vcmask 621568  }
 0x214   :  { %v2084_v21 = vsel %vm3067_vm2, %v2081_v43, %v1928_v17  ;;  %vm2110_vm2 = vcmask 916480  }
 0x215   :  { %v1936_v58 = vpop.permute.xlu0 %1935 }
 0x216   :  { %v1810_v35 = vpop.permute.xlu1 %1809 }
 0x217   :  { %v2040_v31 = vsel %vm2038_vm3, %v2037_v5, %v1810_v35  ;;  %vm3068_vm3 = vcmask 654336  }
 0x218   :  { %v2087_v0 = vsel %vm3068_vm3, %v2084_v21, %v1936_v58  ;;  %vm3073_vm3 = vcmask 949248  }
 0x219   :  { %v1944_v37 = vpop.permute.xlu0 %1943 }
 0x21a   :  { %v1818_v63 = vpop.permute.xlu1 %1817 }
 0x21b   :  { %v2043_v49 = vsel %vm2041_vm4, %v2040_v31, %v1818_v63  ;;  %vm3069_vm4 = vcmask 687104  }
 0x21c   :  { %v2090_v32 = vsel %vm3069_vm4, %v2087_v0, %v1944_v37  ;;  %vm3072_vm4 = vcmask 982016  }
 0x21d   :  { %v1952_v11 = vpop.permute.xlu0 %1951 }
 0x21e   :  { %v1826_v59 = vpop.permute.xlu1 %1825 }
 0x21f   :  { %v2046_v8 = vsel %vm2044_vm5, %v2043_v49, %v1826_v59  ;;  %vm3070_vm5 = vcmask 719872  }
 0x220   :  { %v2093_v41 = vsel %vm3070_vm5, %v2090_v32, %v1952_v11  ;;  %vm3071_vm5 = vcmask 1014784  }
 0x221   :  { %v1960_v29 = vpop.permute.xlu0 %1959 }
 0x222   :  { %v1834_v7 = vpop.permute.xlu1 %1833 }
 0x223   :  { %v2049_v44 = vsel %vm2047_vm6, %v2046_v8, %v1834_v7  ;;  %vm2095_vm6 = vcmask 752640  }
 0x224   :  { %v2096_v47 = vsel %vm2095_vm6, %v2093_v41, %v1960_v29 }
 0x225   :  { %v1968_v20 = vpop.permute.xlu0 %1967 }
 0x226   :  { %v1842_v23 = vpop.permute.xlu1 %1841 }
 0x227   :  { %v2052_v25 = vsel %vm2050_vm7, %v2049_v44, %v1842_v23  ;;  %vm2098_vm7 = vcmask 785408  }
 0x228   :  { %v2099_v36 = vsel %vm2098_vm7, %v2096_v47, %v1968_v20 }
 0x229   :  { %v1976_v26 = vpop.permute.xlu0 %1975 }
 0x22a   :  { %v1850_v50 = vpop.permute.xlu1 %1849 }
 0x22b   :  { %v2999_v2 = vsel %vm2053_vm8, %v2052_v25, %v1850_v50  ;;  %vm2101_vm8 = vcmask 818176  }
 0x22c   :  { %v2102_v60 = vsel %vm2101_vm8, %v2099_v36, %v1976_v26 }
 0x22d   :  { %v1984_v27 = vpop.permute.xlu0 %1983 }
 0x22e   :  { %v1858_v1 = vpop.permute.xlu1 %1857  ;;  %v2105_v56 = vsel %vm2104_vm0, %v2102_v60, %v1984_v27 }
 0x22f   :  { %v2058_v3 = vsel %vm2056_vm9, %v2999_v2, %v1858_v1  ;;  %vm3111_vm9 = vcmask 621568  }
 0x231   :  { %v1992_v9 = vpop.permute.xlu0 %1991 }
 0x232   :  { %v1866_v24 = vpop.permute.xlu1 %1865  ;;  %v2108_v15 = vsel %vm2107_vm1, %v2105_v56, %v1992_v9 }
 0x233   :  { %v2061_v58 = vsel %vm2059_vm10, %v2058_v3, %v1866_v24  ;;  %vm3113_vm10 = vcmask 687104  }
 0x235   :  { %v2000_v52 = vpop.permute.xlu0 %1999 }
 0x236   :  { %v1874_v18 = vpop.permute.xlu1 %1873  ;;  %v2111_v39 = vsel %vm2110_vm2, %v2108_v15, %v2000_v52 }
 0x237   :  { %v2064_v35 = vsel %vm2062_vm11, %v2061_v58, %v1874_v18  ;;  %vm3114_vm11 = vcmask 719872  }
 0x239   :  { %v2008_v61 = vpop.permute.xlu0 %2007 }
 0x23a   :  { %v1882_v55 = vpop.permute.xlu1 %1881  ;;  %v2114_v34 = vsel %vm3073_vm3, %v2111_v39, %v2008_v61  ;;  %vm3112_vm3 = vcmask 654336  }
 0x23b   :  { %v2067_v31 = vsel %vm2065_vm12, %v2064_v35, %v1882_v55  ;;  %vm3115_vm12 = vcmask 949248  }
 0x23d   :  { %v2016_v57 = vpop.permute.xlu0 %2015 }
 0x23e   :  { %v1890_v54 = vpop.permute.xlu1 %1889  ;;  %v2117_v53 = vsel %vm3072_vm4, %v2114_v34, %v2016_v57  ;;  %vm3110_vm4 = vcmask 588800  }
 0x23f   :  { %v2070_v37 = vsel %vm2068_vm13, %v2067_v31, %v1890_v54  ;;  %vm3116_vm13 = vcmask 982016  }
 0x241   :  { %v2024_v40 = vpop.permute.xlu0 %2023 }
 0x242   :  { %v2120_v45 = vsel %vm3071_vm5, %v2117_v53, %v2024_v40  ;;  %v1898_v46 = vpop.permute.xlu1 %1897  ;;  %vm3109_vm5 = vcmask 556032  }
 0x243   :  { %2122 = vst [vmem:[#allocation5] sm:$0xff] %v2120_v45  ;;  %v2073_v49 = vsel %vm2071_vm14, %v2070_v37, %v1898_v46  ;;  %vm3117_vm14 = vcmask 1014784  }
 0x246   :  { %v1906_v6 = vpop.permute.xlu1 %1905 }
 0x247   :  { %v2076_v11 = vsel %vm2074_vm15, %v2073_v49, %v1906_v6 }
 0x24a   :  { %v1914_v13 = vpop.permute.xlu1 %1913 }
 0x24b   :  { %v2079_v59 = vsel %vm3109_vm5, %v2076_v11, %v1914_v13 }
 0x24e   :  { %v1922_v14 = vpop.permute.xlu1 %1921 }
 0x24f   :  { %v2082_v8 = vsel %vm3110_vm4, %v2079_v59, %v1922_v14 }
 0x252   :  { %v1930_v33 = vpop.permute.xlu1 %1929 }
 0x253   :  { %v2085_v7 = vsel %vm3111_vm9, %v2082_v8, %v1930_v33 }
 0x256   :  { %v1938_v16 = vpop.permute.xlu1 %1937 }
 0x257   :  { %v2088_v44 = vsel %vm3112_vm3, %v2085_v7, %v1938_v16 }
 0x25a   :  { %v1946_v38 = vpop.permute.xlu1 %1945 }
 0x25b   :  { %v2091_v20 = vsel %vm3113_vm10, %v2088_v44, %v1946_v38 }
 0x25e   :  { %v1954_v30 = vpop.permute.xlu1 %1953 }
 0x25f   :  { %v2094_v23 = vsel %vm3114_vm11, %v2091_v20, %v1954_v30 }
 0x262   :  { %v1962_v42 = vpop.permute.xlu1 %1961 }
 0x263   :  { %v2097_v26 = vsel %vm2095_vm6, %v2094_v23, %v1962_v42 }
 0x266   :  { %v1970_v62 = vpop.permute.xlu1 %1969 }
 0x267   :  { %v2100_v50 = vsel %vm2098_vm7, %v2097_v26, %v1970_v62 }
 0x26a   :  { %v1978_v17 = vpop.permute.xlu1 %1977 }
 0x26b   :  { %v2103_v2 = vsel %vm2101_vm8, %v2100_v50, %v1978_v17 }
 0x26e   :  { %v1986_v5 = vpop.permute.xlu1 %1985 }
 0x26f   :  { %v2106_v10 = vsel %vm2104_vm0, %v2103_v2, %v1986_v5 }
 0x272   :  { %v1994_v63 = vpop.permute.xlu1 %1993 }
 0x273   :  { %v2109_v51 = vsel %vm2107_vm1, %v2106_v10, %v1994_v63 }
 0x276   :  { %v2002_v29 = vpop.permute.xlu1 %2001 }
 0x277   :  { %v2112_v1 = vsel %vm2110_vm2, %v2109_v51, %v2002_v29 }
 0x27a   :  { %v2010_v25 = vpop.permute.xlu1 %2009 }
 0x27b   :  { %v2115_v4 = vsel %vm3115_vm12, %v2112_v1, %v2010_v25 }
 0x27e   :  { %v2018_v27 = vpop.permute.xlu1 %2017 }
 0x27f   :  { %v2118_v19 = vsel %vm3116_vm13, %v2115_v4, %v2018_v27 }
 0x282   :  { %v2026_v28 = vpop.permute.xlu1 %2025 }
 0x283   :  { %v2121_v9 = vsel %vm3117_vm14, %v2118_v19, %v2026_v28 }
 0x284   :  { %2123 = vst [vmem:[#allocation5 + $0x8] sm:$0xff] %v2121_v9 }
 0x285   :  { %2211 = shalt.err (!%p2208_p12)
}
 0x286   :  { %s2212_s26 = scalar_lea.hbm %s3062_s1, 256 }
 0x287   :  { %p2213_p13 = scmp.ne.s32.totalorder %s3062_s1, %s2212_s26  ;;  %p2216_p0 = scmp.lt.u32.totalorder %s2212_s26, %s3062_s1 }
 0x289   :  { %p2218_p1 = pnand %p2216_p0, %p2213_p13 }
 0x28b   :  { %2221 = shalt.err (!%p2218_p1)
}
 0x28c   :  { %2135 = dma.vmem_to_hbm [thread:$0]  %s2130_s21, 256, %s3062_s1, [#allocation4], %s2227_s16, %s2227_s16, %s2228_s17  }
 0x28d   :  { %2224 = dma.done.wait [#allocation4], 256  }
 0x28e   :  { %2225 = vsyncadd [#allocation4], 4294967040 }
 0x28f   :  { %2139 = vsyncpa [#allocation3], 1 }
 0x290   :  { %2140 = vsyncpa [#allocation4], 1 }

// kernel: tpu_custom_call.1
= control target key start
LH: loop header
LB: loop body
LE: loop exit
PB: predicated region body
PF: predicated region fallthrough
CT: control target
= control target key end

     0   :  { %6 = vsyncpa [#allocation3], 0  ;;  %s738_s6 = smov [#allocation2]   ;;  %s1019_s0 = inlined_call_operand.hbm [shape: f32[16,4,32], index: 0, kind: input, shape index: {}]   ;;  %s1020_s1 = inlined_call_operand.vmem [shape: f32[16,32,4], index: 1, kind: output, shape index: {}]  }
   0x1   :  { %s12_s7 = sshll.u32 %s738_s6, 4  ;;  %s714_s10 = scalar_lea.hbm %s1019_s0, 1024  ;;  %s13_s7 = int_to_ptr.vmem [resolvable:$true] %s12_s7 }
   0x2   :  { %p715_p0 = scmp.ne.s32.totalorder %s1019_s0, %s714_s10  ;;  %p718_p1 = scmp.lt.u32.totalorder %s714_s10, %s1019_s0 }
   0x4   :  { %p720_p2 = pnand %p718_p1, %p715_p0 }
   0x6   :  { %723 = shalt.err (!%p720_p2)
}
   0x7   :  { %s724_s15 = scalar_lea.vmem %s13_s7, 1024  ;;  %p729_p4 = scmp.lt.s32.totalorder %s13_s7, %s13_s7 }
   0x8   :  { %p725_p3 = scmp.ne.s32.totalorder %s13_s7, %s724_s15  ;;  %p730_p5 = scmp.lt.s32.totalorder %s724_s15, %s724_s15 }
   0xa   :  { %p731_p6 = por %p730_p5, %p729_p4 }
   0xc   :  { %p732_p7 = pnand %p731_p6, %p725_p3 }
   0xe   :  { %735 = shalt.err (!%p732_p7)
}
   0xf   :  { %s739_s16 = smov 64   ;;  %s740_s17 = smov 4  }
  0x10   :  { %18 = dma.hbm_to_vmem [thread:$0]  %s1019_s0, 1024, %s13_s7, [#allocation3], %s739_s16, %s739_s16, %s740_s17  }
  0x11   :  { %736 = dma.done.wait [#allocation3], 1024  }
  0x12   :  { %737 = vsyncadd [#allocation3], 4294966272  ;;  %v100_v0 = vld [vmem:[#allocation2 + $0x8] sm:$0xf]  ;;  %v22_v1 = vld [vmem:[#allocation2] sm:$0xf] }
  0x13   :  { %101 = vxpose.xlu1.b32.start.end [1/1] (short) (narrow) %v100_v0, 32  ;;  %23 = vxpose.xlu0.b32.start.end [1/1] (short) (narrow) %v22_v1, 32  ;;  %v139_v2 = vld [vmem:[#allocation2 + $0xc] sm:$0xf]  ;;  %v61_v3 = vld [vmem:[#allocation2 + $0x4] sm:$0xf] }
  0x14   :  { %v217_v4 = vld [vmem:[#allocation2 + $0x14] sm:$0xf]  ;;  %v178_v5 = vld [vmem:[#allocation2 + $0x10] sm:$0xf]  ;;  %v295_v6 = vld [vmem:[#allocation2 + $0x1c] sm:$0xf] }
  0x15   :  { %v256_v7 = vld [vmem:[#allocation2 + $0x18] sm:$0xf]  ;;  %v373_v8 = vld [vmem:[#allocation2 + $0x24] sm:$0xf]  ;;  %v334_v9 = vld [vmem:[#allocation2 + $0x20] sm:$0xf] }
  0x16   :  { %v451_v10 = vld [vmem:[#allocation2 + $0x2c] sm:$0xf]  ;;  %v412_v11 = vld [vmem:[#allocation2 + $0x28] sm:$0xf]  ;;  %v529_v12 = vld [vmem:[#allocation2 + $0x34] sm:$0xf] }
  0x17   :  { %v490_v13 = vld [vmem:[#allocation2 + $0x30] sm:$0xf]  ;;  %v607_v14 = vld [vmem:[#allocation2 + $0x3c] sm:$0xf]  ;;  %v568_v15 = vld [vmem:[#allocation2 + $0x38] sm:$0xf] }
  0x18   :  { %vm55_vm0 = vcmask 31744  }
  0x20   :  { %140 = vxpose.xlu1.b32.start.end [1/1] (short) (narrow) %v139_v2, 32  ;;  %62 = vxpose.xlu0.b32.start.end [1/1] (short) (narrow) %v61_v3, 32 }
  0x2d   :  { %218 = vxpose.xlu1.b32.start.end [1/1] (short) (narrow) %v217_v4, 32  ;;  %179 = vxpose.xlu0.b32.start.end [1/1] (short) (narrow) %v178_v5, 32 }
  0x3a   :  { %296 = vxpose.xlu1.b32.start.end [1/1] (short) (narrow) %v295_v6, 32  ;;  %257 = vxpose.xlu0.b32.start.end [1/1] (short) (narrow) %v256_v7, 32 }
  0x47   :  { %374 = vxpose.xlu1.b32.start.end [1/1] (short) (narrow) %v373_v8, 32  ;;  %335 = vxpose.xlu0.b32.start.end [1/1] (short) (narrow) %v334_v9, 32 }
  0x54   :  { %452 = vxpose.xlu1.b32.start.end [1/1] (short) (narrow) %v451_v10, 32  ;;  %413 = vxpose.xlu0.b32.start.end [1/1] (short) (narrow) %v412_v11, 32 }
  0x61   :  { %530 = vxpose.xlu1.b32.start.end [1/1] (short) (narrow) %v529_v12, 32  ;;  %491 = vxpose.xlu0.b32.start.end [1/1] (short) (narrow) %v490_v13, 32 }
  0x6e   :  { %608 = vxpose.xlu1.b32.start.end [1/1] (short) (narrow) %v607_v14, 32  ;;  %569 = vxpose.xlu0.b32.start.end [1/1] (short) (narrow) %v568_v15, 32 }
  0x93   :  { %v117_v16 = vpop.trf.xlu1  ;;  %v39_v17 = vpop.trf.xlu0 }
  0x94   :  { %654 = vst.msk [vmem:[%s1020_s1 + $0x40] sm:$0xff] %vm55_vm0, %v117_v16  ;;  %56 = vst.msk [vmem:[%s1020_s1] sm:$0xff] %vm55_vm0, %v39_v17 }
  0x97   :  { %v118_v18 = vpop.trf.xlu1  ;;  %v40_v19 = vpop.trf.xlu0 }
  0x98   :  { %655 = vst.msk [vmem:[%s1020_s1 + $0x48] sm:$0xff] %vm55_vm0, %v118_v18  ;;  %57 = vst.msk [vmem:[%s1020_s1 + $0x8] sm:$0xff] %vm55_vm0, %v40_v19 }
  0x9b   :  { %v119_v20 = vpop.trf.xlu1  ;;  %v41_v21 = vpop.trf.xlu0 }
  0x9c   :  { %656 = vst.msk [vmem:[%s1020_s1 + $0x50] sm:$0xff] %vm55_vm0, %v119_v20  ;;  %58 = vst.msk [vmem:[%s1020_s1 + $0x10] sm:$0xff] %vm55_vm0, %v41_v21 }
  0x9f   :  { %v120_v22 = vpop.trf.xlu1  ;;  %v42_v23 = vpop.trf.xlu0 }
  0xa0   :  { %657 = vst.msk [vmem:[%s1020_s1 + $0x58] sm:$0xff] %vm55_vm0, %v120_v22  ;;  %59 = vst.msk [vmem:[%s1020_s1 + $0x18] sm:$0xff] %vm55_vm0, %v42_v23 }
  0xa3   :  { %v156_v24 = vpop.trf.xlu1  ;;  %v78_v25 = vpop.trf.xlu0 }
  0xa4   :  { %658 = vst.msk [vmem:[%s1020_s1 + $0x60] sm:$0xff] %vm55_vm0, %v156_v24  ;;  %650 = vst.msk [vmem:[%s1020_s1 + $0x20] sm:$0xff] %vm55_vm0, %v78_v25 }
  0xa7   :  { %v157_v26 = vpop.trf.xlu1  ;;  %v79_v27 = vpop.trf.xlu0 }
  0xa8   :  { %659 = vst.msk [vmem:[%s1020_s1 + $0x68] sm:$0xff] %vm55_vm0, %v157_v26  ;;  %651 = vst.msk [vmem:[%s1020_s1 + $0x28] sm:$0xff] %vm55_vm0, %v79_v27 }
  0xab   :  { %v158_v28 = vpop.trf.xlu1  ;;  %v80_v29 = vpop.trf.xlu0 }
  0xac   :  { %660 = vst.msk [vmem:[%s1020_s1 + $0x70] sm:$0xff] %vm55_vm0, %v158_v28  ;;  %652 = vst.msk [vmem:[%s1020_s1 + $0x30] sm:$0xff] %vm55_vm0, %v80_v29 }
  0xaf   :  { %v159_v30 = vpop.trf.xlu1  ;;  %v81_v31 = vpop.trf.xlu0 }
  0xb0   :  { %661 = vst.msk [vmem:[%s1020_s1 + $0x78] sm:$0xff] %vm55_vm0, %v159_v30  ;;  %653 = vst.msk [vmem:[%s1020_s1 + $0x38] sm:$0xff] %vm55_vm0, %v81_v31 }
  0xb3   :  { %v234_v32 = vpop.trf.xlu1  ;;  %v195_v33 = vpop.trf.xlu0 }
  0xb4   :  { %666 = vst.msk [vmem:[%s1020_s1 + $0xa0] sm:$0xff] %vm55_vm0, %v234_v32  ;;  %662 = vst.msk [vmem:[%s1020_s1 + $0x80] sm:$0xff] %vm55_vm0, %v195_v33 }
  0xb7   :  { %v235_v34 = vpop.trf.xlu1  ;;  %v196_v35 = vpop.trf.xlu0 }
  0xb8   :  { %667 = vst.msk [vmem:[%s1020_s1 + $0xa8] sm:$0xff] %vm55_vm0, %v235_v34  ;;  %663 = vst.msk [vmem:[%s1020_s1 + $0x88] sm:$0xff] %vm55_vm0, %v196_v35 }
  0xbb   :  { %v236_v36 = vpop.trf.xlu1  ;;  %v197_v37 = vpop.trf.xlu0 }
  0xbc   :  { %668 = vst.msk [vmem:[%s1020_s1 + $0xb0] sm:$0xff] %vm55_vm0, %v236_v36  ;;  %664 = vst.msk [vmem:[%s1020_s1 + $0x90] sm:$0xff] %vm55_vm0, %v197_v37 }
  0xbf   :  { %v237_v38 = vpop.trf.xlu1  ;;  %v198_v39 = vpop.trf.xlu0 }
  0xc0   :  { %669 = vst.msk [vmem:[%s1020_s1 + $0xb8] sm:$0xff] %vm55_vm0, %v237_v38  ;;  %665 = vst.msk [vmem:[%s1020_s1 + $0x98] sm:$0xff] %vm55_vm0, %v198_v39 }
  0xc3   :  { %v312_v40 = vpop.trf.xlu1  ;;  %v273_v41 = vpop.trf.xlu0 }
  0xc4   :  { %674 = vst.msk [vmem:[%s1020_s1 + $0xe0] sm:$0xff] %vm55_vm0, %v312_v40  ;;  %670 = vst.msk [vmem:[%s1020_s1 + $0xc0] sm:$0xff] %vm55_vm0, %v273_v41 }
  0xc7   :  { %v313_v42 = vpop.trf.xlu1  ;;  %v274_v43 = vpop.trf.xlu0 }
  0xc8   :  { %675 = vst.msk [vmem:[%s1020_s1 + $0xe8] sm:$0xff] %vm55_vm0, %v313_v42  ;;  %671 = vst.msk [vmem:[%s1020_s1 + $0xc8] sm:$0xff] %vm55_vm0, %v274_v43 }
  0xcb   :  { %v314_v44 = vpop.trf.xlu1  ;;  %v275_v45 = vpop.trf.xlu0 }
  0xcc   :  { %676 = vst.msk [vmem:[%s1020_s1 + $0xf0] sm:$0xff] %vm55_vm0, %v314_v44  ;;  %672 = vst.msk [vmem:[%s1020_s1 + $0xd0] sm:$0xff] %vm55_vm0, %v275_v45 }
  0xcf   :  { %v315_v46 = vpop.trf.xlu1  ;;  %v276_v47 = vpop.trf.xlu0 }
  0xd0   :  { %677 = vst.msk [vmem:[%s1020_s1 + $0xf8] sm:$0xff] %vm55_vm0, %v315_v46  ;;  %673 = vst.msk [vmem:[%s1020_s1 + $0xd8] sm:$0xff] %vm55_vm0, %v276_v47 }
  0xd3   :  { %v390_v48 = vpop.trf.xlu1  ;;  %v351_v49 = vpop.trf.xlu0 }
  0xd4   :  { %682 = vst.msk [vmem:[%s1020_s1 + $0x120] sm:$0xff] %vm55_vm0, %v390_v48  ;;  %678 = vst.msk [vmem:[%s1020_s1 + $0x100] sm:$0xff] %vm55_vm0, %v351_v49 }
  0xd7   :  { %v391_v50 = vpop.trf.xlu1  ;;  %v352_v51 = vpop.trf.xlu0 }
  0xd8   :  { %683 = vst.msk [vmem:[%s1020_s1 + $0x128] sm:$0xff] %vm55_vm0, %v391_v50  ;;  %679 = vst.msk [vmem:[%s1020_s1 + $0x108] sm:$0xff] %vm55_vm0, %v352_v51 }
  0xdb   :  { %v392_v52 = vpop.trf.xlu1  ;;  %v353_v53 = vpop.trf.xlu0 }
  0xdc   :  { %684 = vst.msk [vmem:[%s1020_s1 + $0x130] sm:$0xff] %vm55_vm0, %v392_v52  ;;  %680 = vst.msk [vmem:[%s1020_s1 + $0x110] sm:$0xff] %vm55_vm0, %v353_v53 }
  0xdf   :  { %v393_v54 = vpop.trf.xlu1  ;;  %v354_v55 = vpop.trf.xlu0 }
  0xe0   :  { %685 = vst.msk [vmem:[%s1020_s1 + $0x138] sm:$0xff] %vm55_vm0, %v393_v54  ;;  %681 = vst.msk [vmem:[%s1020_s1 + $0x118] sm:$0xff] %vm55_vm0, %v354_v55 }
  0xe3   :  { %v468_v56 = vpop.trf.xlu1  ;;  %v429_v57 = vpop.trf.xlu0 }
  0xe4   :  { %690 = vst.msk [vmem:[%s1020_s1 + $0x160] sm:$0xff] %vm55_vm0, %v468_v56  ;;  %686 = vst.msk [vmem:[%s1020_s1 + $0x140] sm:$0xff] %vm55_vm0, %v429_v57 }
  0xe7   :  { %v469_v58 = vpop.trf.xlu1  ;;  %v430_v59 = vpop.trf.xlu0 }
  0xe8   :  { %691 = vst.msk [vmem:[%s1020_s1 + $0x168] sm:$0xff] %vm55_vm0, %v469_v58  ;;  %687 = vst.msk [vmem:[%s1020_s1 + $0x148] sm:$0xff] %vm55_vm0, %v430_v59 }
  0xeb   :  { %v470_v60 = vpop.trf.xlu1  ;;  %v431_v61 = vpop.trf.xlu0 }
  0xec   :  { %692 = vst.msk [vmem:[%s1020_s1 + $0x170] sm:$0xff] %vm55_vm0, %v470_v60  ;;  %688 = vst.msk [vmem:[%s1020_s1 + $0x150] sm:$0xff] %vm55_vm0, %v431_v61 }
  0xef   :  { %v471_v62 = vpop.trf.xlu1  ;;  %v432_v63 = vpop.trf.xlu0 }
  0xf0   :  { %693 = vst.msk [vmem:[%s1020_s1 + $0x178] sm:$0xff] %vm55_vm0, %v471_v62  ;;  %689 = vst.msk [vmem:[%s1020_s1 + $0x158] sm:$0xff] %vm55_vm0, %v432_v63 }
  0xf3   :  { %v546_v0 = vpop.trf.xlu1  ;;  %v507_v1 = vpop.trf.xlu0 }
  0xf4   :  { %698 = vst.msk [vmem:[%s1020_s1 + $0x1a0] sm:$0xff] %vm55_vm0, %v546_v0  ;;  %694 = vst.msk [vmem:[%s1020_s1 + $0x180] sm:$0xff] %vm55_vm0, %v507_v1 }
  0xf7   :  { %v547_v2 = vpop.trf.xlu1  ;;  %v508_v3 = vpop.trf.xlu0 }
  0xf8   :  { %699 = vst.msk [vmem:[%s1020_s1 + $0x1a8] sm:$0xff] %vm55_vm0, %v547_v2  ;;  %695 = vst.msk [vmem:[%s1020_s1 + $0x188] sm:$0xff] %vm55_vm0, %v508_v3 }
  0xfb   :  { %v548_v4 = vpop.trf.xlu1  ;;  %v509_v5 = vpop.trf.xlu0 }
  0xfc   :  { %700 = vst.msk [vmem:[%s1020_s1 + $0x1b0] sm:$0xff] %vm55_vm0, %v548_v4  ;;  %696 = vst.msk [vmem:[%s1020_s1 + $0x190] sm:$0xff] %vm55_vm0, %v509_v5 }
  0xff   :  { %v549_v6 = vpop.trf.xlu1  ;;  %v510_v7 = vpop.trf.xlu0 }
 0x100   :  { %701 = vst.msk [vmem:[%s1020_s1 + $0x1b8] sm:$0xff] %vm55_vm0, %v549_v6  ;;  %697 = vst.msk [vmem:[%s1020_s1 + $0x198] sm:$0xff] %vm55_vm0, %v510_v7 }
 0x103   :  { %v624_v8 = vpop.trf.xlu1  ;;  %v585_v9 = vpop.trf.xlu0 }
 0x104   :  { %706 = vst.msk [vmem:[%s1020_s1 + $0x1e0] sm:$0xff] %vm55_vm0, %v624_v8  ;;  %702 = vst.msk [vmem:[%s1020_s1 + $0x1c0] sm:$0xff] %vm55_vm0, %v585_v9 }
 0x107   :  { %v625_v10 = vpop.trf.xlu1  ;;  %v586_v11 = vpop.trf.xlu0 }
 0x108   :  { %707 = vst.msk [vmem:[%s1020_s1 + $0x1e8] sm:$0xff] %vm55_vm0, %v625_v10  ;;  %703 = vst.msk [vmem:[%s1020_s1 + $0x1c8] sm:$0xff] %vm55_vm0, %v586_v11 }
 0x10b   :  { %v626_v12 = vpop.trf.xlu1  ;;  %v587_v13 = vpop.trf.xlu0 }
 0x10c   :  { %708 = vst.msk [vmem:[%s1020_s1 + $0x1f0] sm:$0xff] %vm55_vm0, %v626_v12  ;;  %704 = vst.msk [vmem:[%s1020_s1 + $0x1d0] sm:$0xff] %vm55_vm0, %v587_v13 }
 0x10f   :  { %v627_v14 = vpop.trf.xlu1  ;;  %v588_v15 = vpop.trf.xlu0 }
 0x110   :  { %709 = vst.msk [vmem:[%s1020_s1 + $0x1f8] sm:$0xff] %vm55_vm0, %v627_v14  ;;  %705 = vst.msk [vmem:[%s1020_s1 + $0x1d8] sm:$0xff] %vm55_vm0, %v588_v15 }
 0x111   :  { %649 = vsyncpa [#allocation3], 1 }

</bundles_post_ra>
